<compile_context>
chip_gen: v6e
topology: v6e:2x2x1
jax: 0.10.0
libtpu: 0.0.40
codegen_flags: <defaults>
</compile_context>

<pallas_src>
import jax
import jax.numpy as jnp
from jax.experimental import pallas as pl
from jax.experimental.pallas import tpu as pltpu

INPUT_DIM = 128     # demo feature width; must be a multiple of 128 (real CIFAR
                    # features 3*32*32 = 3072 already are).
H1, H2, H3 = 32, 16, 1
H1P = 128           # fc1's 32 hidden units zero-padded to a full lane width
TB_DEFAULT = 1024   # batch tile (multiple of 128 -> lane-dense output rows);
                    # at real D=3072 this is a ~12 MiB f32 x tile per step.


def mlp_kernel(x_ref, w1_ref, b1_ref, w23_ref, b23_ref, o_ref):
    # x arrives as f32 (no separate wrapper cast pass: that would be
    # read 4B + write 2B + re-read 2B per element); cast to bf16 here on the
    # VPU, which is free under the HBM-bandwidth-bound roofline.
    x_bf = x_ref[...].astype(jnp.bfloat16)
    # fc1: (TB, D) @ (D, H1P), bf16 operands, f32 accumulation on the MXU.
    h = jnp.dot(x_bf, w1_ref[...], preferred_element_type=jnp.float32)
    # bias + ReLU in f32 (v5e VPU/EUP have no bf16); bf16 cast fused into the
    # same expression so the f32 and bf16 copies of h are never both live.
    h_bf = jnp.maximum(h + b1_ref[...], 0.0).astype(jnp.bfloat16)
    # TODO(synk): train-mode nn.Dropout(0.6) would need pltpu.prng_random_bits
    # masking + 1/(1-p) scaling; eval-mode dropout (identity) is what is done.
    # fused fc2∘fc3: contract the lane (feature) axes of (8, H1P) and (TB, H1P)
    # -> (8, TB). Only row 0 of w23 holds the real folded weights, so row 0 of
    # s is the pre-activation already laid out as a lane-dense row. Any hidden
    # vxpose of h_bf lands on the XLU slot, which has slack (kernel is
    # HBM-bound); check with pl.lower_as_mlir if tuning further.
    s = jax.lax.dot_general(
        w23_ref[...], h_bf,
        dimension_numbers=(((1,), (1,)), ((), ())),
        preferred_element_type=jnp.float32)
    o_ref[0] = jax.nn.sigmoid(s[0:1, :] + b23_ref[0])


def prepare_params(params):
    """Pad / fold / cast params once, outside the kernel."""
    w1, b1, w2, b2, w3, b3 = params          # (D,32),(1,32),(32,16),(1,16),(16,1),(1,1)
    D = w1.shape[0]
    # lane-align the hidden dim: pad fc1's 32 output features to 128 with zeros
    # (zero rows/cols contribute nothing -> results unchanged).
    w1p = jnp.zeros((D, H1P), jnp.float32).at[:, :H1].set(w1)
    b1p = jnp.zeros((1, H1P), jnp.float32).at[:, :H1].set(b1)
    # fold fc2∘fc3 (exact: eval-mode dropout between them is the identity).
    w23 = w2 @ w3                             # (32, 1)
    b23 = (b2 @ w3 + b3).reshape((1,))        # scalar bias -> SMEM
    # lay folded weights out as an (8, H1P) block (row 0 real, rows 1..7 zero)
    # so the last matmul emits a lane-dense (1, TB) output row directly.
    w23r = jnp.zeros((8, H1P), jnp.float32).at[0, :H1].set(w23[:, 0])
    # bf16 matmul operands; biases stay f32.
    return (w1p.astype(jnp.bfloat16), b1p,
            w23r.astype(jnp.bfloat16), b23.astype(jnp.float32))


def network_forward(x, params, *, tb=TB_DEFAULT):
    """x: (B, INPUT_DIM) float32. Returns (B, 1) float32 (eval-mode forward)."""
    B, D = x.shape
    assert D % 128 == 0, "input features must be lane-aligned (pad at init)"

    w1p, b1p, w23r, b23 = prepare_params(params)

    # Tile / pad the batch: tb is a multiple of 128 (lane-dense output rows)
    # and never larger than the 128-rounded batch; ragged batches are zero-
    # padded and the pad rows sliced off at the end.
    b128 = -(-B // 128) * 128
    tb = max(128, min((tb // 128) * 128, b128))
    b_pad = -(-B // tb) * tb
    if b_pad != B:
        x = jnp.pad(x, ((0, b_pad - B), (0, 0)))
    grid = (b_pad // tb,)

    # VMEM budget: the double-buffered f32 x tile dominates. Request explicitly
    # so larger tb (e.g. tb=1024 at D=3072 -> ~24 MiB) still compiles on v5e's
    # 16 MiB default scoped VMEM, while staying under v7x's 64 MiB physical.
    tile_bytes = (2 * tb * D * 4          # x tile, double-buffered, f32
                  + 2 * D * H1P * 2       # w1 (bf16)
                  + 2 * H1P * 4           # b1 (f32)
                  + 2 * 8 * H1P * 2       # folded w2@w3 (bf16)
                  + 2 * tb * 4)           # (1, 1, tb) output row
    vmem_limit = int(min(max(2 * tile_bytes, 16 * 1024 * 1024),
                         48 * 1024 * 1024))

    # Advisory cost estimate: lets XLA overlap this short, HBM-bound call with
    # neighbouring ops instead of serializing around it.
    cost = pl.CostEstimate(
        flops=2 * b_pad * D * H1P + 2 * b_pad * H1P * 8,
        transcendentals=b_pad,  # sigmoid
        bytes_accessed=(b_pad * D * 4 + b_pad * 4
                        + D * H1P * 2 + 8 * H1P * 2 + (H1P + 1) * 4),
    )

    const = lambda shape: pl.BlockSpec(shape, lambda i: (0,) * len(shape))
    out = pl.pallas_call(
        mlp_kernel,
        out_shape=jax.ShapeDtypeStruct((b_pad // tb, 1, tb), jnp.float32),
        grid_spec=pltpu.PrefetchScalarGridSpec(
            num_scalar_prefetch=0,
            grid=grid,
            in_specs=[
                pl.BlockSpec((tb, D), lambda i: (i, 0)),            # x tile (f32)
                const((D, H1P)),                                    # w1 (bf16), constant index -> no re-DMA
                const((1, H1P)),                                    # b1 (f32)
                const((8, H1P)),                                    # folded w2@w3 (bf16)
                pl.BlockSpec(memory_space=pltpu.MemorySpace.SMEM),  # folded bias scalar
            ],
            # lane-dense (1, tb) row per grid step; reshaped to (B, 1) below.
            out_specs=pl.BlockSpec((1, 1, tb), lambda i: (i, 0, 0)),
        ),
        compiler_params=pltpu.CompilerParams(
            dimension_semantics=("parallel",),   # shards steps across v7x's 2 TCs
            vmem_limit_bytes=vmem_limit),
        cost_estimate=cost,
    )(x, w1p, b1p, w23r, b23)
    return out.reshape(b_pad, H3)[:B]


def init_params(key, input_dim):
    """Deterministic init mimicking torch.nn.Linear (uniform ±1/sqrt(fan_in))."""
    ks = jax.random.split(key, 6)
    def lin(kw, kb, fan_in, fan_out):
        bound = 1.0 / jnp.sqrt(fan_in)
        w = jax.random.uniform(kw, (fan_in, fan_out), jnp.float32, -bound, bound)
        b = jax.random.uniform(kb, (1, fan_out), jnp.float32, -bound, bound)
        return w, b
    w1, b1 = lin(ks[0], ks[1], input_dim, H1)
    w2, b2 = lin(ks[2], ks[3], H1, H2)
    w3, b3 = lin(ks[4], ks[5], H2, H3)
    return (w1, b1, w2, b2, w3, b3)


def reference_forward_kernel_math(x, params):
    """Pure-JAX mirror of the exact math the kernel performs (bf16 operands,
    padded / fused weights) — tight-tolerance check of the Pallas path."""
    w1p, b1p, w23r, b23 = prepare_params(params)
    h = jnp.dot(x.astype(jnp.bfloat16), w1p, preferred_element_type=jnp.float32)
    h = jnp.maximum(h + b1p, 0.0)
    z = jnp.dot(h.astype(jnp.bfloat16), w23r[0:1, :].T,
                preferred_element_type=jnp.float32)
    return jax.nn.sigmoid(z + b23[0])


def reference_forward_module(x, params):
    """Plain f32 eval-mode forward of the original torch module."""
    w1, b1, w2, b2, w3, b3 = params
    h = jnp.maximum(x @ w1 + b1, 0.0)
    h = h @ w2 + b2          # dropout = identity in eval mode
    h = h @ w3 + b3
    return jax.nn.sigmoid(h)


if __name__ == "__main__":
    key = jax.random.PRNGKey(0)
    kx, kp = jax.random.split(key)
    params = init_params(kp, INPUT_DIM)

    # 8 grid steps (>= 4 per TensorCore on v7x) so BlockSpec double-buffering
    # hides each x tile's DMA behind the previous tile's compute.
    B = 8 * TB_DEFAULT
    x = jax.random.normal(kx, (B, INPUT_DIM), jnp.float32)

    out = jax.block_until_ready(network_forward(x, params))
    assert out.shape == (B, H3)

    ref_tight = reference_forward_kernel_math(x, params)
    ref_module = reference_forward_module(x, params)
    assert jnp.allclose(out, ref_tight, atol=1e-4, rtol=1e-4), \
        "mismatch vs kernel-math reference"
    assert jnp.allclose(out, ref_module, atol=5e-2, rtol=5e-2), \
        "mismatch vs f32 module reference"

    # ragged-batch path (zero-pad to the tile size, slice the pad rows off).
    B2 = 300
    x2 = jax.random.normal(jax.random.PRNGKey(1), (B2, INPUT_DIM), jnp.float32)
    out2 = jax.block_until_ready(network_forward(x2, params))
    assert out2.shape == (B2, H3)
    assert jnp.allclose(out2, reference_forward_module(x2, params),
                        atol=5e-2, rtol=5e-2), "mismatch on ragged batch"

    print("KERNEL_OK")
</pallas_src>

<mosaic_0001>
module attributes {stable_mosaic.version = 11 : i64} {
  func.func @mlp_kernel(%arg0: i32, %arg1: memref<1024x128xf32, #tpu.memory_space<vmem>>, %arg2: memref<128x128xbf16, #tpu.memory_space<vmem>>, %arg3: memref<1x128xf32, #tpu.memory_space<vmem>>, %arg4: memref<8x128xbf16, #tpu.memory_space<vmem>>, %arg5: memref<1xf32, #tpu.memory_space<smem>>, %arg6: memref<1x1x1024xf32, #tpu.memory_space<vmem>>) attributes {dimension_semantics = [#tpu.dimension_semantics<parallel>], iteration_bounds = array<i64: 8>, scalar_prefetch = 0 : i64, scratch_operands = 0 : i64, tpu.core_type = #tpu.core_type<tc>, window_params = [{transform_indices = @transform_0, window_bounds = array<i64: 1024, 128>}, {pipeline_mode = #tpu.pipeline_mode<synchronous>, transform_indices = @transform_1, window_bounds = array<i64: 128, 128>}, {pipeline_mode = #tpu.pipeline_mode<synchronous>, transform_indices = @transform_2, window_bounds = array<i64: 1, 128>}, {pipeline_mode = #tpu.pipeline_mode<synchronous>, transform_indices = @transform_3, window_bounds = array<i64: 8, 128>}, {transform_indices = @transform_4, window_bounds = array<i64: 1>}, {transform_indices = @transform_5, window_bounds = array<i64: 1, 1, 1024>}]} {
    %c0 = arith.constant 0 : index
    %c0_0 = arith.constant 0 : index
    %0 = vector.load %arg1[%c0, %c0_0] : memref<1024x128xf32, #tpu.memory_space<vmem>>, vector<1024x128xf32>
    %1 = arith.truncf %0 : vector<1024x128xf32> to vector<1024x128xbf16>
    %c0_1 = arith.constant 0 : index
    %c0_2 = arith.constant 0 : index
    %2 = vector.load %arg2[%c0_1, %c0_2] : memref<128x128xbf16, #tpu.memory_space<vmem>>, vector<128x128xbf16>
    %cst = arith.constant dense<0.000000e+00> : vector<1024x128xf32>
    %3 = tpu.matmul %1, %2, %cst {dimension_numbers = #tpu.dot_dimension_numbers<[1], [0], [0], [1], [0, 0, 1, 1], [], []>} : vector<1024x128xbf16>, vector<128x128xbf16>, vector<1024x128xf32> -> vector<1024x128xf32>
    %c0_3 = arith.constant 0 : index
    %c0_4 = arith.constant 0 : index
    %4 = vector.load %arg3[%c0_3, %c0_4] : memref<1x128xf32, #tpu.memory_space<vmem>>, vector<1x128xf32>
    %5 = vector.broadcast %4 : vector<1x128xf32> to vector<1024x128xf32>
    %6 = arith.addf %3, %5 : vector<1024x128xf32>
    %cst_5 = arith.constant 0.000000e+00 : f32
    %7 = vector.broadcast %cst_5 : f32 to vector<1024x128xf32>
    %8 = arith.maximumf %6, %7 : vector<1024x128xf32>
    %9 = arith.truncf %8 : vector<1024x128xf32> to vector<1024x128xbf16>
    %c0_6 = arith.constant 0 : index
    %c0_7 = arith.constant 0 : index
    %10 = vector.load %arg4[%c0_6, %c0_7] : memref<8x128xbf16, #tpu.memory_space<vmem>>, vector<8x128xbf16>
    %cst_8 = arith.constant dense<0.000000e+00> : vector<8x1024xf32>
    %11 = tpu.matmul %10, %9, %cst_8 {dimension_numbers = #tpu.dot_dimension_numbers<[1], [1], [0], [0], [0, 0, 1, 0], [], []>} : vector<8x128xbf16>, vector<1024x128xbf16>, vector<8x1024xf32> -> vector<8x1024xf32>
    %12 = vector.extract_strided_slice %11 {offsets = [0, 0], sizes = [1, 1024], strides = [1, 1]} : vector<8x1024xf32> to vector<1x1024xf32>
    %c0_9 = arith.constant 0 : index
    %13 = memref.load %arg5[%c0_9] : memref<1xf32, #tpu.memory_space<smem>>
    %14 = vector.broadcast %13 : f32 to vector<1x1024xf32>
    %15 = arith.addf %12, %14 : vector<1x1024xf32>
    %16 = arith.negf %15 : vector<1x1024xf32>
    %17 = math.exp %16 : vector<1x1024xf32>
    %cst_10 = arith.constant 1.000000e+00 : f32
    %18 = vector.broadcast %cst_10 : f32 to vector<1x1024xf32>
    %19 = arith.addf %18, %17 : vector<1x1024xf32>
    %20 = arith.divf %18, %19 : vector<1x1024xf32>
    %c0_11 = arith.constant 0 : index
    %c0_12 = arith.constant 0 : index
    %c0_13 = arith.constant 0 : index
    %21 = vector.load %arg6[%c0_11, %c0_12, %c0_13] : memref<1x1x1024xf32, #tpu.memory_space<vmem>>, vector<1x1x1024xf32>
    %22 = vector.shape_cast %21 : vector<1x1x1024xf32> to vector<1x1024xf32>
    %23 = vector.shape_cast %20 : vector<1x1024xf32> to vector<1x1x1024xf32>
    tpu.vector_store %arg6[%c0_11, %c0_12, %c0_13], %23 {strides = array<i32>} : memref<1x1x1024xf32, #tpu.memory_space<vmem>>, vector<1x1x1024xf32>,
    return
  }
  func.func @transform_0(%arg0: i32) -> (i32, i32) {
    %c0_i32 = arith.constant 0 : i32
    %c0_i32_0 = arith.constant 0 : i32
    return %arg0, %c0_i32 : i32, i32
  }
  func.func @transform_1(%arg0: i32) -> (i32, i32) {
    %c0_i32 = arith.constant 0 : i32
    %c0_i32_0 = arith.constant 0 : i32
    %c0_i32_1 = arith.constant 0 : i32
    return %c0_i32, %c0_i32_0 : i32, i32
  }
  func.func @transform_2(%arg0: i32) -> (i32, i32) {
    %c0_i32 = arith.constant 0 : i32
    %c0_i32_0 = arith.constant 0 : i32
    %c0_i32_1 = arith.constant 0 : i32
    return %c0_i32, %c0_i32_0 : i32, i32
  }
  func.func @transform_3(%arg0: i32) -> (i32, i32) {
    %c0_i32 = arith.constant 0 : i32
    %c0_i32_0 = arith.constant 0 : i32
    %c0_i32_1 = arith.constant 0 : i32
    return %c0_i32, %c0_i32_0 : i32, i32
  }
  func.func @transform_4(%arg0: i32) -> i32 {
    %c0_i32 = arith.constant 0 : i32
    %c0_i32_0 = arith.constant 0 : i32
    return %c0_i32 : i32
  }
  func.func @transform_5(%arg0: i32) -> (i32, i32, i32) {
    %c0_i32 = arith.constant 0 : i32
    %c0_i32_0 = arith.constant 0 : i32
    %c0_i32_1 = arith.constant 0 : i32
    return %arg0, %c0_i32, %c0_i32_0 : i32, i32, i32
  }
}

</mosaic_0001>

<bundles_post_ra>
// kernel: tpu_custom_call.1
= control target key start
LH: loop header
LB: loop body
LE: loop exit
PB: predicated region body
PF: predicated region fallthrough
CT: control target
= control target key end

     0   :  { %s2983_s0 = inlined_call_operand.hbm [shape: f32[8192,128], index: 0, kind: input, shape index: {}]   ;;  %s2984_s1 = inlined_call_operand.hbm [shape: bf16[128,128], index: 1, kind: input, shape index: {}]   ;;  %s2985_s2 = inlined_call_operand.hbm [shape: f32[1,128], index: 2, kind: input, shape index: {}]   ;;  %s2986_s3 = inlined_call_operand.hbm [shape: bf16[8,128], index: 3, kind: input, shape index: {}]   ;;  %s2987_s4 = inlined_call_operand.<no memory space> [shape: f32[1], index: 4, kind: input, shape index: {}]   ;;  %s2988_s5 = inlined_call_operand.hbm [shape: f32[8,1,1024], index: 5, kind: output, shape index: {}]  }
   0x1   :  { %10 = sst [smem:[#allocation2]] %s2987_s4 }
   0x2   :  { %11 = vsyncpa [#allocation4], 0 }
   0x3   :  { %13 = vsyncpa [#allocation4 + $0x1], 0 }
   0x4   :  { %14 = vsyncpa [#allocation7], 0 }
   0x5   :  { %15 = vsyncpa [#allocation10], 0 }
   0x6   :  { %16 = vsyncpa [#allocation5], 0 }
   0x7   :  { %18 = vsyncpa [#allocation5 + $0x1], 0  ;;  %s2356_s20 = smov 0   ;;  %s2358_s21 = smov 0  }
   0x8   :  { %s2360_s22 = smov 0   ;;  %s2362_s23 = smov 0  }
   0x9 LB: > { %s2377_s4 = sadd.s32 4294967295, %s2311_s23   ;;  %s1682_s24 = sadd.s32 4294967294, %s2311_s23   ;;  %s2311_s23 = sphi %s2362_s23, %s3011_s23   ;;  %s2307_s22 = sphi %s2360_s22, %s3010_s22   ;;  %s2303_s21 = sphi %s2358_s21, %s3009_s21   ;;  %s2299_s20 = sphi %s2356_s20, %s3008_s20  }
   0xa   : > { %p44_p0 = scmp.ne.s32.totalorder %s2303_s21, %s2299_s20  ;;  %p2989_p1 = scmp.eq.s32.totalorder %s2377_s4, 0 }
   0xb   : > { %p158_p3 = scmp.eq.s32.totalorder %s1682_s24, 7  ;;  %p1683_p5 = scmp.ge.s32.totalorder %s2311_s23, 1 }
   0xc   : > { %p2386_p4 = por %p2989_p1, %p44_p0  ;;  %p165_p7 = scmp.lt.s32.totalorder %s2311_s23, 9 }
   0xd   : > { %p2391_p6 = por %p158_p3, %p44_p0  ;;  %s2313_s28 = smov [#allocation6]  }
   0xe   : > { %s2993_s25 = scalar_select %p2386_p4, 1, 0 }
   0xf   : > { %s2994_s26 = scalar_select %p2391_p6, 1, 0 }
  0x10   : > { %p2396_p8 = pnand %p1683_p5, %p165_p7  ;;  %s177_s29 = sshll.u32 %s2313_s28, 4  ;;  %s178_s29 = int_to_ptr.vmem [resolvable:$true] %s177_s29 }
  0x11   : > { %s2314_s6 = smov [#allocation8]   ;;  %s2315_s8 = smov [#allocation9]  }
  0x12   : > { %s2995_s27 = scalar_select %p2396_p8, 1, 0 }
  0x13   : > { %p2025_p9 = pneg %p2396_p8  ;;  %s191_s7 = sshll.u32 %s2314_s6, 4  ;;  %s192_s7 = int_to_ptr.vmem [resolvable:$true] %s191_s7 }
  0x14   : > { %s202_s9 = sshll.u32 %s2315_s8, 4  ;;  %s2144_s10 = scalar_lea.vmem %s178_s29, 1024  ;;  %s203_s9 = int_to_ptr.vmem [resolvable:$true] %s202_s9 }
  0x15   : > { %p2404_p10 = pnand %p2025_p9, %p2989_p1  ;;  %p2145_p12 = scmp.ne.s32.totalorder %s178_s29, %s2144_s10 }
  0x16   : > { %p2152_p3 = scmp.lt.s32.totalorder %s178_s29, %s178_s29  ;;  %p2153_p5 = scmp.lt.s32.totalorder %s2144_s10, %s2144_s10 }
  0x17   : > { %p2135_p11 = pneg %p2404_p10 }
  0x18   : > { %p2154_p7 = por %p2153_p5, %p2152_p3 }
  0x19   : > { %p2147_p13 = pnand %p2145_p12, %p2135_p11 }
  0x1b   : > { %p2148_p0 = pneg %p2147_p13 }
  0x1d   : > { %p2155_p9 = pnand %p2154_p7, %p2148_p0 }
  0x1f   : > { %2158 = shalt.err (!%p2155_p9)
}
  0x20   : > { %s2316_s11 = smov 64   ;;  %s2317_s12 = smov 4  }
  0x21   : > { %2028 = dma.hbm_to_vmem [thread:$0]  (!%p2404_p10), %s2984_s1, 1024, %s178_s29, [#allocation7], %s2316_s11, %s2316_s11, %s2317_s12  }
  0x22   : > { %s2170_s15 = scalar_lea.vmem %s192_s7, 16  ;;  %s2177_s16 = scalar_lea.vmem %s192_s7, 32 }
  0x23   : > { %p2171_p1 = scmp.ne.s32.totalorder %s192_s7, %s2170_s15  ;;  %p2178_p2 = scmp.lt.s32.totalorder %s192_s7, %s192_s7 }
  0x24   : > { %p2179_p3 = scmp.lt.s32.totalorder %s2177_s16, %s2170_s15 }
  0x25   : > { %p2173_p12 = pnand %p2171_p1, %p2135_p11 }
  0x26   : > { %p2180_p0 = por %p2179_p3, %p2178_p2 }
  0x27   : > { %p2174_p13 = pneg %p2173_p12 }
  0x29   : > { %p2181_p5 = pnand %p2180_p0, %p2174_p13 }
  0x2b   : > { %2184 = shalt.err (!%p2181_p5)
}
  0x2c   : > { %2031 = dma.hbm_to_vmem [thread:$0]  (!%p2404_p10), %s2985_s2, 16, %s192_s7, [#allocation7]  }
  0x2d   : > { %s2196_s19 = scalar_lea.vmem %s203_s9, 64  ;;  %p2204_p12 = scmp.lt.s32.totalorder %s203_s9, %s203_s9 }
  0x2e   : > { %p2197_p7 = scmp.ne.s32.totalorder %s203_s9, %s2196_s19  ;;  %p2205_p6 = scmp.lt.s32.totalorder %s2196_s19, %s2196_s19 }
  0x30   : > { %p2199_p1 = pnand %p2197_p7, %p2135_p11  ;;  %p2206_p4 = por %p2205_p6, %p2204_p12 }
  0x32   : > { %p2200_p9 = pneg %p2199_p1 }
  0x34   : > { %p2207_p2 = pnand %p2206_p4, %p2200_p9 }
  0x36   : > { %2210 = shalt.err (!%p2207_p2)
}
  0x37   : > { %2034 = dma.hbm_to_vmem [thread:$0]  (!%p2404_p10), %s2986_s3, 64, %s203_s9, [#allocation10]  }
  0x38   : > { %s2435_s29 = sadd.s32 1, %s2311_s23   ;;  %s31_s30 = sadd.s32 1, %s2307_s22 }
  0x39   : > { %s28_s6 = ssub.s32 %s2311_s23, %s2435_s29  ;;  %p38_p6 = scmp.ne.s32.totalorder %s2307_s22, %s2303_s21 }
  0x3a   : > { %p29_p4 = scmp.eq.s32.totalorder %s28_s6, 0  ;;  %p39_p11 = scmp.eq.s32.totalorder %s2311_s23, 0 }
  0x3b   : > { %p2046_p13 = scmp.lt.s32.totalorder %s2311_s23, 8  ;;  %p2997_p0 = scmp.eq.s32.totalorder %s2377_s4, 7 }
  0x3c   : > { %s2445_s7 = scalar_select %p29_p4, %s2307_s22, %s31_s30  }
  0x3d   : > { %p40_p3 = por %p39_p11, %p38_p6  ;;  %p2449_p5 = por %p2997_p0, %p38_p6 }
  0x3e   : > { %s216_s10 = sand.u32 1, %s2307_s22   ;;  %s1719_s11 = sshll.u32 %s2311_s23, 14 }
  0x3f   : > { %s2998_s8 = scalar_select %p2449_p5, 1, 0 }
  0x40   : > { %s1688_s9 = sshll.u32 %s216_s10, 10  ;;  %s2458_s14 = scalar_lea.hbm %s2983_s0, %s1719_s11 }
  0x41   : > { %s220_s15 = scalar_lea.vmem [#allocation3], %s1688_s9  ;;  %p2460_p10 = pnand %p2046_p13, %p40_p3 }
  0x42   : > { %s227_s16 = sshll.u32 %s220_s15, 4  ;;  %s2466_s18 = scalar_lea.sflag [#allocation4], %s216_s10  ;;  %s2464_s16 = int_to_ptr.vmem [resolvable:$true] %s227_s16 }
  0x43   : > { %s2211_s19 = scalar_lea.hbm %s2458_s14, 16384  ;;  %p2213_p1 = pneg %p2460_p10 }
  0x44   : > { %p2212_p7 = scmp.ne.s32.totalorder %s2458_s14, %s2211_s19  ;;  %s2216_s6 = scalar_lea.hbm %s2983_s0, 131072 }
  0x45   : > { %p2217_p2 = scmp.lt.s32.totalorder %s2458_s14, %s2983_s0  ;;  %p2218_p4 = scmp.lt.s32.totalorder %s2216_s6, %s2211_s19 }
  0x46   : > { %p2214_p9 = pnand %p2213_p1, %p2212_p7 }
  0x47   : > { %p2219_p6 = por %p2218_p4, %p2217_p2 }
  0x48   : > { %p2215_p12 = pneg %p2214_p9 }
  0x4a   : > { %p2220_p11 = pnand %p2219_p6, %p2215_p12 }
  0x4c   : > { %2223 = shalt.err (!%p2220_p11)
}
  0x4d   : > { %s2224_s10 = scalar_lea.vmem %s2464_s16, 16384  ;;  %s2318_s9 = smov [#allocation3]  }
  0x4e   : > { %p2225_p13 = scmp.ne.s32.totalorder %s2464_s16, %s2224_s10  ;;  %s2229_s12 = sshll.u32 %s2318_s9, 4  ;;  %s2230_s12 = int_to_ptr.vmem [resolvable:$false] %s2229_s12 }
  0x4f   : > { %s2231_s13 = scalar_lea.vmem %s2230_s12, 32768  ;;  %p2232_p7 = scmp.lt.s32.totalorder %s2464_s16, %s2230_s12 }
  0x50   : > { %p2227_p3 = pnand %p2225_p13, %p2213_p1  ;;  %p2233_p9 = scmp.lt.s32.totalorder %s2231_s13, %s2224_s10 }
  0x52   : > { %p2228_p0 = pneg %p2227_p3  ;;  %p2234_p5 = por %p2233_p9, %p2232_p7 }
  0x54   : > { %p2235_p8 = pnand %p2234_p5, %p2228_p0 }
  0x56   : > { %2238 = shalt.err (!%p2235_p8)
}
  0x57   : > { %s2319_s15 = smov 128   ;;  %s2320_s19 = smov 8  }
  0x58   : > { %2038 = dma.hbm_to_vmem [thread:$0]  (!%p2460_p10), %s2458_s14, 16384, %s2464_s16, %s2466_s18, %s2319_s15, %s2319_s15, %s2320_s19  }
  0x59   : > { %p3000_p1 = scmp.ne.s32.totalorder %s2995_s27, 0 }
  0x5a   : > { %s2490_s24 = sand.u32 (!%p3000_p1), 1, %s2303_s21   ;;  %p3001_p8 = scmp.ne.s32.totalorder (!%p3000_p1), %s2993_s25, 0 }
  0x5b   : > { %239 = sbr.rel (%p3000_p1) target bundleno = 903 (0x387), region = 40  ;;  %s1692_s28 = sshll.u32 (!%p3000_p1), %s2490_s24, 10 }
  0x5c   : > { %s242_s6 = scalar_lea.sflag (!%p3000_p1), [#allocation4], %s2490_s24  ;;  %s2494_s30 = scalar_lea.vmem (!%p3000_p1), [#allocation3], %s1692_s28 }
  0x60   : > { %2282 = dma.done.wait (%p3001_p8), %s242_s6, 16384  }
  0x61   : > { %2284 = vsyncadd (%p3001_p8), %s242_s6, 4294950912  ;;  %p3002_p5 = scmp.eq.s32.totalorder %s2377_s4, 0 }
  0x63   : > { %2286 = dma.done.wait (%p3002_p5), [#allocation7], 1040   ;;  %p3003_p10 = pmov %p3002_p5 }
  0x64   : > { %p3004_p12 = pmov %p3002_p5 }
  0x65   : > { %2288 = vsyncadd (%p3003_p10), [#allocation7], 4294966256 }
  0x66   : > { %2290 = dma.done.wait (%p3004_p12), [#allocation10], 64   ;;  %p3005_p2 = pmov %p3002_p5 }
  0x67   : > { %v2091_v0 = vld [vmem:[#allocation6 + $0x38] sm:$0xff]   ;;  %v2092_v1 = vld [vmem:[#allocation6 + $0x30] sm:$0xff]   ;;  %v2093_v2 = vld [vmem:[#allocation6 + $0x28] sm:$0xff]   ;;  %s1451_s25 = sld [smem:[#allocation2]]  ;;  %s1696_s27 = sshll.u32 %s2490_s24, 3 }
  0x68   : > { %2292 = vsyncadd (%p3005_p2), [#allocation10], 4294967232  ;;  %1865 = vmatprep.subr.bf16.mxu0 %v2091_v0  ;;  %v2094_v3 = vld [vmem:[#allocation6 + $0x20] sm:$0xff]   ;;  %v287_v5 = vld [vmem:[%s2494_s30 + $0x8] sm:$0xff]  ;;  %s1720_s14 = sshll.u32 %s2377_s4, 7  ;;  %s283_s16 = scalar_lea.vmem [#allocation11], %s1696_s27 }
  0x69   : > { %1866 = vmatpush3.bf16.msra.mxu0 %v2091_v0  ;;  %v286_v4 = vld [vmem:[%s2494_s30] sm:$0xff]  ;;  %v2095_v7 = vld [vmem:[#allocation6 + $0x18] sm:$0xff]   ;;  %v2096_v8 = vld [vmem:[#allocation6 + $0x10] sm:$0xff]   ;;  %s1583_s17 = sshll.u32 %s283_s16, 4  ;;  %s1581_s10 = scalar_lea.hbm %s2988_s5, %s1720_s14  ;;  %s1584_s17 = int_to_ptr.vmem [resolvable:$true] %s1583_s17 }
  0x6a   : > { %1867 = vmatprep.subr.bf16.mxu0 %v2092_v1  ;;  %v414_v6 = vpack.c.bf16 %v287_v5, %v286_v4  ;;  %v2097_v9 = vld [vmem:[#allocation6 + $0x8] sm:$0xff]   ;;  %v2098_v10 = vld [vmem:[#allocation6] sm:$0xff]   ;;  %v288_v11 = vld [vmem:[%s2494_s30 + $0x10] sm:$0xff]  ;;  %s1569_s9 = scalar_lea.sflag [#allocation5], %s2490_s24  ;;  %s2239_s12 = scalar_lea.vmem %s1584_s17, 128 }
  0x6b   : > { %v289_v12 = vld [vmem:[%s2494_s30 + $0x18] sm:$0xff]  ;;  %v290_v13 = vld [vmem:[%s2494_s30 + $0x20] sm:$0xff]  ;;  %v291_v14 = vld [vmem:[%s2494_s30 + $0x28] sm:$0xff]  ;;  %p2240_p4 = scmp.ne.s32.totalorder %s1584_s17, %s2239_s12  ;;  %p3006_p6 = scmp.ne.s32.totalorder %s2998_s8, 0 }
  0x6c   : > { %1881 = vmatprep.mubr.bf16.mxu0 %v414_v6  ;;  %v415_v15 = vpack.c.bf16 %v289_v12, %v288_v11  ;;  %v416_v16 = vpack.c.bf16 %v291_v14, %v290_v13  ;;  %v292_v17 = vld [vmem:[%s2494_s30 + $0x30] sm:$0xff]  ;;  %v293_v18 = vld [vmem:[%s2494_s30 + $0x38] sm:$0xff]  ;;  %v294_v19 = vld [vmem:[%s2494_s30 + $0x40] sm:$0xff]  ;;  %s2322_s13 = smov [#allocation11]  }
  0x6d   : > { %1868 = vmatpush3.bf16.msra.mxu0 %v2092_v1  ;;  %v295_v20 = vld [vmem:[%s2494_s30 + $0x48] sm:$0xff]  ;;  %v417_v21 = vpack.c.bf16 %v293_v18, %v292_v17  ;;  %v296_v23 = vld [vmem:[%s2494_s30 + $0x50] sm:$0xff]  ;;  %v297_v24 = vld [vmem:[%s2494_s30 + $0x58] sm:$0xff]  ;;  %p2241_p11 = pnand %p2240_p4, %p3006_p6  ;;  %s2243_s15 = sshll.u32 %s2322_s13, 4  ;;  %s2244_s15 = int_to_ptr.vmem [resolvable:$false] %s2243_s15 }
  0x6e   : > { %1869 = vmatprep.subr.bf16.mxu0 %v2093_v2  ;;  %v418_v22 = vpack.c.bf16 %v295_v20, %v294_v19  ;;  %v298_v25 = vld [vmem:[%s2494_s30 + $0x60] sm:$0xff]  ;;  %v299_v26 = vld [vmem:[%s2494_s30 + $0x68] sm:$0xff]  ;;  %v419_v27 = vpack.c.bf16 %v297_v24, %v296_v23  ;;  %v300_v29 = vld [vmem:[%s2494_s30 + $0x70] sm:$0xff]  ;;  %s2245_s4 = scalar_lea.vmem %s2244_s15, 256  ;;  %p2246_p3 = scmp.lt.s32.totalorder %s1584_s17, %s2244_s15 }
  0x6f   : > { %v420_v28 = vpack.c.bf16 %v299_v26, %v298_v25  ;;  %v301_v30 = vld [vmem:[%s2494_s30 + $0x78] sm:$0xff]  ;;  %v302_v31 = vld [vmem:[%s2494_s30 + $0x80] sm:$0xff]  ;;  %v303_v32 = vld [vmem:[%s2494_s30 + $0x88] sm:$0xff]  ;;  %p2242_p13 = pneg %p2241_p11  ;;  %p2247_p0 = scmp.lt.s32.totalorder %s2245_s4, %s2239_s12 }
  0x70   : > { %v421_v33 = vpack.c.bf16 %v301_v30, %v300_v29  ;;  %v422_v34 = vpack.c.bf16 %v303_v32, %v302_v31  ;;  %v304_v35 = vld [vmem:[%s2494_s30 + $0x90] sm:$0xff]  ;;  %v305_v36 = vld [vmem:[%s2494_s30 + $0x98] sm:$0xff]  ;;  %v306_v37 = vld [vmem:[%s2494_s30 + $0xa0] sm:$0xff] }
  0x71   : > { %1870 = vmatpush3.bf16.msra.mxu0 %v2093_v2  ;;  %v307_v38 = vld [vmem:[%s2494_s30 + $0xa8] sm:$0xff]  ;;  %v423_v39 = vpack.c.bf16 %v305_v36, %v304_v35  ;;  %v308_v41 = vld [vmem:[%s2494_s30 + $0xb0] sm:$0xff]  ;;  %v309_v42 = vld [vmem:[%s2494_s30 + $0xb8] sm:$0xff]  ;;  %p2248_p7 = por %p2247_p0, %p2246_p3 }
  0x72   : > { %1871 = vmatprep.subr.bf16.mxu0 %v2094_v3  ;;  %v424_v40 = vpack.c.bf16 %v307_v38, %v306_v37  ;;  %v310_v43 = vld [vmem:[%s2494_s30 + $0xc0] sm:$0xff]  ;;  %v311_v44 = vld [vmem:[%s2494_s30 + $0xc8] sm:$0xff]  ;;  %v425_v45 = vpack.c.bf16 %v309_v42, %v308_v41  ;;  %v312_v47 = vld [vmem:[%s2494_s30 + $0xd0] sm:$0xff] }
  0x73   : > { %v426_v46 = vpack.c.bf16 %v311_v44, %v310_v43  ;;  %v313_v48 = vld [vmem:[%s2494_s30 + $0xd8] sm:$0xff]  ;;  %v314_v49 = vld [vmem:[%s2494_s30 + $0xe0] sm:$0xff]  ;;  %v315_v50 = vld [vmem:[%s2494_s30 + $0xe8] sm:$0xff]  ;;  %p2249_p9 = pnand %p2248_p7, %p2242_p13 }
  0x74   : > { %v427_v51 = vpack.c.bf16 %v313_v48, %v312_v47  ;;  %v428_v52 = vpack.c.bf16 %v315_v50, %v314_v49  ;;  %v316_v53 = vld [vmem:[%s2494_s30 + $0xf0] sm:$0xff]  ;;  %v317_v54 = vld [vmem:[%s2494_s30 + $0xf8] sm:$0xff]  ;;  %v318_v55 = vld [vmem:[%s2494_s30 + $0x100] sm:$0xff] }
  0x75   : > { %1872 = vmatpush3.bf16.msra.mxu0 %v2094_v3  ;;  %v319_v56 = vld [vmem:[%s2494_s30 + $0x108] sm:$0xff]  ;;  %v429_v57 = vpack.c.bf16 %v317_v54, %v316_v53  ;;  %v320_v59 = vld [vmem:[%s2494_s30 + $0x110] sm:$0xff]  ;;  %v321_v60 = vld [vmem:[%s2494_s30 + $0x118] sm:$0xff] }
  0x76   : > { %1873 = vmatprep.subr.bf16.mxu0 %v2095_v7  ;;  %v430_v58 = vpack.c.bf16 %v319_v56, %v318_v55  ;;  %v322_v61 = vld [vmem:[%s2494_s30 + $0x120] sm:$0xff]  ;;  %v323_v62 = vld [vmem:[%s2494_s30 + $0x128] sm:$0xff]  ;;  %v431_v63 = vpack.c.bf16 %v321_v60, %v320_v59  ;;  %v324_v1 = vld [vmem:[%s2494_s30 + $0x130] sm:$0xff] }
  0x77   : > { %v432_v0 = vpack.c.bf16 %v323_v62, %v322_v61  ;;  %v325_v2 = vld [vmem:[%s2494_s30 + $0x138] sm:$0xff]  ;;  %v326_v3 = vld [vmem:[%s2494_s30 + $0x140] sm:$0xff]  ;;  %v327_v4 = vld [vmem:[%s2494_s30 + $0x148] sm:$0xff] }
  0x78   : > { %v433_v5 = vpack.c.bf16 %v325_v2, %v324_v1  ;;  %v434_v6 = vpack.c.bf16 %v327_v4, %v326_v3  ;;  %v332_v13 = vld [vmem:[%s2494_s30 + $0x170] sm:$0xff]  ;;  %v333_v14 = vld [vmem:[%s2494_s30 + $0x178] sm:$0xff] }
  0x79   : > { %1874 = vmatpush3.bf16.msra.mxu0 %v2095_v7  ;;  %v328_v7 = vld [vmem:[%s2494_s30 + $0x150] sm:$0xff]  ;;  %v437_v17 = vpack.c.bf16 %v333_v14, %v332_v13  ;;  %v337_v20 = vld [vmem:[%s2494_s30 + $0x198] sm:$0xff] }
  0x7a   : > { %1875 = vmatprep.subr.bf16.mxu0 %v2096_v8  ;;  %v336_v19 = vld [vmem:[%s2494_s30 + $0x190] sm:$0xff]  ;;  %v341_v26 = vld [vmem:[%s2494_s30 + $0x1b8] sm:$0xff] }
  0x7b   : > { %v439_v23 = vpack.c.bf16 %v337_v20, %v336_v19  ;;  %v340_v25 = vld [vmem:[%s2494_s30 + $0x1b0] sm:$0xff]  ;;  %v345_v32 = vld [vmem:[%s2494_s30 + $0x1d8] sm:$0xff] }
  0x7c   : > { %v441_v29 = vpack.c.bf16 %v341_v26, %v340_v25  ;;  %v344_v31 = vld [vmem:[%s2494_s30 + $0x1d0] sm:$0xff]  ;;  %v349_v38 = vld [vmem:[%s2494_s30 + $0x1f8] sm:$0xff] }
  0x7d   : > { %1876 = vmatpush3.bf16.msra.mxu0 %v2096_v8  ;;  %v329_v8 = vld [vmem:[%s2494_s30 + $0x158] sm:$0xff]  ;;  %v443_v35 = vpack.c.bf16 %v345_v32, %v344_v31  ;;  %v348_v37 = vld [vmem:[%s2494_s30 + $0x1f0] sm:$0xff] }
  0x7e   : > { %1877 = vmatprep.subr.bf16.mxu0 %v2097_v9  ;;  %v435_v11 = vpack.c.bf16 %v329_v8, %v328_v7  ;;  %v445_v41 = vpack.c.bf16 %v349_v38, %v348_v37  ;;  %v352_v43 = vld [vmem:[%s2494_s30 + $0x210] sm:$0xff]  ;;  %v353_v44 = vld [vmem:[%s2494_s30 + $0x218] sm:$0xff]  ;;  %v2614_v37 = vld [vmem:[#allocation9] sm:$0xf] }
  0x7f   : > { %v447_v47 = vpack.c.bf16 %v353_v44, %v352_v43  ;;  %v356_v49 = vld [vmem:[%s2494_s30 + $0x230] sm:$0xff]  ;;  %v357_v50 = vld [vmem:[%s2494_s30 + $0x238] sm:$0xff]  ;;  %1809 = vmatprep.mubr.bf16.mxu1 %v2614_v37 }
  0x80   : > { %v449_v53 = vpack.c.bf16 %v357_v50, %v356_v49  ;;  %v360_v55 = vld [vmem:[%s2494_s30 + $0x250] sm:$0xff]  ;;  %v361_v56 = vld [vmem:[%s2494_s30 + $0x258] sm:$0xff] }
  0x81   : > { %1878 = vmatpush3.bf16.msra.mxu0 %v2097_v9  ;;  %v330_v9 = vld [vmem:[%s2494_s30 + $0x160] sm:$0xff]  ;;  %v451_v59 = vpack.c.bf16 %v361_v56, %v360_v55  ;;  %v364_v61 = vld [vmem:[%s2494_s30 + $0x270] sm:$0xff]  ;;  %v365_v62 = vld [vmem:[%s2494_s30 + $0x278] sm:$0xff] }
  0x82   : > { %1879 = vmatprep.subr.bf16.mxu0 %v2098_v10  ;;  %v453_v1 = vpack.c.bf16 %v365_v62, %v364_v61  ;;  %v368_v3 = vld [vmem:[%s2494_s30 + $0x290] sm:$0xff]  ;;  %v369_v4 = vld [vmem:[%s2494_s30 + $0x298] sm:$0xff] }
  0x83   : > { %v455_v7 = vpack.c.bf16 %v369_v4, %v368_v3  ;;  %v392_v55 = vld [vmem:[%s2494_s30 + $0x350] sm:$0xff]  ;;  %v393_v56 = vld [vmem:[%s2494_s30 + $0x358] sm:$0xff] }
  0x85   : > { %1880 = vmatpush3.bf16.msra.mxu0 %v2098_v10  ;;  %v331_v10 = vld [vmem:[%s2494_s30 + $0x168] sm:$0xff] }
  0x86   : > { %v436_v12 = vpack.c.bf16 %v331_v10, %v330_v9  ;;  %v372_v9 = vld [vmem:[%s2494_s30 + $0x2b0] sm:$0xff]  ;;  %v373_v10 = vld [vmem:[%s2494_s30 + $0x2b8] sm:$0xff] }
  0x87   : > { %v457_v13 = vpack.c.bf16 %v373_v10, %v372_v9 }
  0x88   : > { %1882 = vmatmul.mubr.bf16.vlgmr.msra.gmra.mxu0 %v415_v15  ;;  %v334_v15 = vld [vmem:[%s2494_s30 + $0x180] sm:$0xff] }
  0x89   : > { %1885 = vmatprep.mubr.bf16.mxu0 %v416_v16  ;;  %v335_v16 = vld [vmem:[%s2494_s30 + $0x188] sm:$0xff] }
  0x8a   : > { %v438_v18 = vpack.c.bf16 %v335_v16, %v334_v15  ;;  %v376_v15 = vld [vmem:[%s2494_s30 + $0x2d0] sm:$0xff]  ;;  %v377_v16 = vld [vmem:[%s2494_s30 + $0x2d8] sm:$0xff] }
  0x8b   : > { %v459_v19 = vpack.c.bf16 %v377_v16, %v376_v15  ;;  %v399_v15 = vld [vmem:[%s2494_s30 + $0x388] sm:$0xff] }
  0x90   : > { %1886 = vmatmul.mubr.bf16.gmra.mxu0 %v417_v21  ;;  %v338_v21 = vld [vmem:[%s2494_s30 + $0x1a0] sm:$0xff] }
  0x91   : > { %1889 = vmatprep.mubr.bf16.mxu0 %v418_v22  ;;  %v339_v22 = vld [vmem:[%s2494_s30 + $0x1a8] sm:$0xff] }
  0x92   : > { %v440_v24 = vpack.c.bf16 %v339_v22, %v338_v21  ;;  %v380_v21 = vld [vmem:[%s2494_s30 + $0x2f0] sm:$0xff]  ;;  %v381_v22 = vld [vmem:[%s2494_s30 + $0x2f8] sm:$0xff] }
  0x93   : > { %v461_v25 = vpack.c.bf16 %v381_v22, %v380_v21  ;;  %v400_v22 = vld [vmem:[%s2494_s30 + $0x390] sm:$0xff] }
  0x98   : > { %1890 = vmatmul.mubr.bf16.gmra.mxu0 %v419_v27  ;;  %v342_v27 = vld [vmem:[%s2494_s30 + $0x1c0] sm:$0xff] }
  0x99   : > { %1893 = vmatprep.mubr.bf16.mxu0 %v420_v28  ;;  %v343_v28 = vld [vmem:[%s2494_s30 + $0x1c8] sm:$0xff] }
  0x9a   : > { %v442_v30 = vpack.c.bf16 %v343_v28, %v342_v27  ;;  %v384_v27 = vld [vmem:[%s2494_s30 + $0x310] sm:$0xff]  ;;  %v385_v28 = vld [vmem:[%s2494_s30 + $0x318] sm:$0xff] }
  0x9b   : > { %v463_v31 = vpack.c.bf16 %v385_v28, %v384_v27 }
  0xa0   : > { %1894 = vmatmul.mubr.bf16.gmra.mxu0 %v421_v33  ;;  %v346_v33 = vld [vmem:[%s2494_s30 + $0x1e0] sm:$0xff] }
  0xa1   : > { %1897 = vmatprep.mubr.bf16.mxu0 %v422_v34  ;;  %v347_v34 = vld [vmem:[%s2494_s30 + $0x1e8] sm:$0xff] }
  0xa2   : > { %v444_v36 = vpack.c.bf16 %v347_v34, %v346_v33  ;;  %v2610_v34 = vld [vmem:[#allocation8] ss:$0 sm:$0xff] }
  0xa8   : > { %1898 = vmatmul.mubr.bf16.gmra.mxu0 %v423_v39  ;;  %v350_v39 = vld [vmem:[%s2494_s30 + $0x200] sm:$0xff] }
  0xa9   : > { %1901 = vmatprep.mubr.bf16.mxu0 %v424_v40  ;;  %v351_v40 = vld [vmem:[%s2494_s30 + $0x208] sm:$0xff] }
  0xaa   : > { %v446_v42 = vpack.c.bf16 %v351_v40, %v350_v39  ;;  %v390_v39 = vld [vmem:[%s2494_s30 + $0x340] sm:$0xff]  ;;  %v391_v40 = vld [vmem:[%s2494_s30 + $0x348] sm:$0xff] }
  0xb0   : > { %1902 = vmatmul.mubr.bf16.gmra.mxu0 %v425_v45  ;;  %v354_v45 = vld [vmem:[%s2494_s30 + $0x220] sm:$0xff] }
  0xb1   : > { %1905 = vmatprep.mubr.bf16.mxu0 %v426_v46  ;;  %v355_v46 = vld [vmem:[%s2494_s30 + $0x228] sm:$0xff] }
  0xb2   : > { %v448_v48 = vpack.c.bf16 %v355_v46, %v354_v45  ;;  %v466_v46 = vpack.c.bf16 %v391_v40, %v390_v39 }
  0xb8   : > { %1906 = vmatmul.mubr.bf16.gmra.mxu0 %v427_v51  ;;  %v358_v51 = vld [vmem:[%s2494_s30 + $0x240] sm:$0xff] }
  0xb9   : > { %1909 = vmatprep.mubr.bf16.mxu0 %v428_v52  ;;  %v359_v52 = vld [vmem:[%s2494_s30 + $0x248] sm:$0xff] }
  0xba   : > { %v450_v54 = vpack.c.bf16 %v359_v52, %v358_v51 }
  0xc0   : > { %1910 = vmatmul.mubr.bf16.gmra.mxu0 %v429_v57  ;;  %v362_v57 = vld [vmem:[%s2494_s30 + $0x260] sm:$0xff] }
  0xc1   : > { %1913 = vmatprep.mubr.bf16.mxu0 %v430_v58  ;;  %v363_v58 = vld [vmem:[%s2494_s30 + $0x268] sm:$0xff] }
  0xc2   : > { %v452_v60 = vpack.c.bf16 %v363_v58, %v362_v57  ;;  %v394_v58 = vld [vmem:[%s2494_s30 + $0x360] sm:$0xff] }
  0xc8   : > { %1914 = vmatmul.mubr.bf16.gmra.mxu0 %v431_v63  ;;  %v366_v63 = vld [vmem:[%s2494_s30 + $0x280] sm:$0xff] }
  0xc9   : > { %1917 = vmatprep.mubr.bf16.mxu0 %v432_v0  ;;  %v367_v0 = vld [vmem:[%s2494_s30 + $0x288] sm:$0xff] }
  0xca   : > { %v454_v2 = vpack.c.bf16 %v367_v0, %v366_v63  ;;  %v467_v63 = vpack.c.bf16 %v393_v56, %v392_v55  ;;  %v409_v55 = vld [vmem:[%s2494_s30 + $0x3d8] sm:$0xff] }
  0xd0   : > { %1918 = vmatmul.mubr.bf16.gmra.mxu0 %v433_v5  ;;  %v370_v5 = vld [vmem:[%s2494_s30 + $0x2a0] sm:$0xff] }
  0xd1   : > { %1921 = vmatprep.mubr.bf16.mxu0 %v434_v6  ;;  %v371_v6 = vld [vmem:[%s2494_s30 + $0x2a8] sm:$0xff] }
  0xd2   : > { %v456_v8 = vpack.c.bf16 %v371_v6, %v370_v5 }
  0xd8   : > { %1922 = vmatmul.mubr.bf16.gmra.mxu0 %v435_v11  ;;  %v374_v11 = vld [vmem:[%s2494_s30 + $0x2c0] sm:$0xff] }
  0xd9   : > { %1925 = vmatprep.mubr.bf16.mxu0 %v436_v12  ;;  %v375_v12 = vld [vmem:[%s2494_s30 + $0x2c8] sm:$0xff] }
  0xda   : > { %v458_v14 = vpack.c.bf16 %v375_v12, %v374_v11  ;;  %v396_v11 = vld [vmem:[%s2494_s30 + $0x370] sm:$0xff]  ;;  %v397_v12 = vld [vmem:[%s2494_s30 + $0x378] sm:$0xff] }
  0xe0   : > { %1926 = vmatmul.mubr.bf16.gmra.mxu0 %v437_v17  ;;  %v378_v17 = vld [vmem:[%s2494_s30 + $0x2e0] sm:$0xff] }
  0xe1   : > { %1929 = vmatprep.mubr.bf16.mxu0 %v438_v18  ;;  %v379_v18 = vld [vmem:[%s2494_s30 + $0x2e8] sm:$0xff] }
  0xe2   : > { %v460_v20 = vpack.c.bf16 %v379_v18, %v378_v17  ;;  %v469_v18 = vpack.c.bf16 %v397_v12, %v396_v11 }
  0xe8   : > { %1930 = vmatmul.mubr.bf16.gmra.mxu0 %v439_v23  ;;  %v382_v23 = vld [vmem:[%s2494_s30 + $0x300] sm:$0xff] }
  0xe9   : > { %1933 = vmatprep.mubr.bf16.mxu0 %v440_v24  ;;  %v383_v24 = vld [vmem:[%s2494_s30 + $0x308] sm:$0xff] }
  0xea   : > { %v462_v26 = vpack.c.bf16 %v383_v24, %v382_v23  ;;  %v401_v23 = vld [vmem:[%s2494_s30 + $0x398] sm:$0xff] }
  0xeb   : > { %v471_v28 = vpack.c.bf16 %v401_v23, %v400_v22 }
  0xf0   : > { %1934 = vmatmul.mubr.bf16.gmra.mxu0 %v441_v29  ;;  %v386_v29 = vld [vmem:[%s2494_s30 + $0x320] sm:$0xff] }
  0xf1   : > { %1937 = vmatprep.mubr.bf16.mxu0 %v442_v30  ;;  %v387_v30 = vld [vmem:[%s2494_s30 + $0x328] sm:$0xff] }
  0xf2   : > { %v464_v32 = vpack.c.bf16 %v387_v30, %v386_v29 }
  0xf8   : > { %1938 = vmatmul.mubr.bf16.gmra.mxu0 %v443_v35  ;;  %v388_v35 = vld [vmem:[%s2494_s30 + $0x330] sm:$0xff] }
  0xf9   : > { %1941 = vmatprep.mubr.bf16.mxu0 %v444_v36  ;;  %v389_v36 = vld [vmem:[%s2494_s30 + $0x338] sm:$0xff] }
  0xfa   : > { %v465_v43 = vpack.c.bf16 %v389_v36, %v388_v35  ;;  %v406_v36 = vld [vmem:[%s2494_s30 + $0x3c0] sm:$0xff] }
 0x100   : > { %1942 = vmatmul.mubr.bf16.gmra.mxu0 %v445_v41 }
 0x101   : > { %1945 = vmatprep.mubr.bf16.mxu0 %v446_v42 }
 0x108   : > { %1946 = vmatmul.mubr.bf16.gmra.mxu0 %v447_v47 }
 0x109   : > { %1949 = vmatprep.mubr.bf16.mxu0 %v448_v48 }
 0x110   : > { %1950 = vmatmul.mubr.bf16.gmra.mxu0 %v449_v53 }
 0x111   : > { %1953 = vmatprep.mubr.bf16.mxu0 %v450_v54 }
 0x118   : > { %1954 = vmatmul.mubr.bf16.gmra.mxu0 %v451_v59  ;;  %v395_v59 = vld [vmem:[%s2494_s30 + $0x368] sm:$0xff] }
 0x119   : > { %1957 = vmatprep.mubr.bf16.mxu0 %v452_v60 }
 0x120   : > { %1958 = vmatmul.mubr.bf16.gmra.mxu0 %v453_v1 }
 0x121   : > { %1961 = vmatprep.mubr.bf16.mxu0 %v454_v2  ;;  %v468_v2 = vpack.c.bf16 %v395_v59, %v394_v58  ;;  %v411_v58 = vld [vmem:[%s2494_s30 + $0x3e8] sm:$0xff] }
 0x128   : > { %1962 = vmatmul.mubr.bf16.gmra.mxu0 %v455_v7 }
 0x129   : > { %1965 = vmatprep.mubr.bf16.mxu0 %v456_v8 }
 0x130   : > { %1966 = vmatmul.mubr.bf16.gmra.mxu0 %v457_v13 }
 0x131   : > { %1969 = vmatprep.mubr.bf16.mxu0 %v458_v14  ;;  %v398_v14 = vld [vmem:[%s2494_s30 + $0x380] sm:$0xff] }
 0x138   : > { %1970 = vmatmul.mubr.bf16.gmra.mxu0 %v459_v19  ;;  %v470_v19 = vpack.c.bf16 %v399_v15, %v398_v14 }
 0x139   : > { %1973 = vmatprep.mubr.bf16.mxu0 %v460_v20 }
 0x140   : > { %1974 = vmatmul.mubr.bf16.gmra.mxu0 %v461_v25  ;;  %v402_v25 = vld [vmem:[%s2494_s30 + $0x3a0] sm:$0xff] }
 0x141   : > { %1977 = vmatprep.mubr.bf16.mxu0 %v462_v26  ;;  %v403_v26 = vld [vmem:[%s2494_s30 + $0x3a8] sm:$0xff] }
 0x142   : > { %v472_v29 = vpack.c.bf16 %v403_v26, %v402_v25 }
 0x148   : > { %v1883_v33 = vpop.f32.mrf.mxu0  ;;  %1978 = vmatmul.mubr.bf16.gmra.mxu0 %v463_v31 }
 0x149   : > { %1981 = vmatprep.mubr.bf16.mxu0 %v464_v32  ;;  %v592_v41 = vadd.f32 %v1883_v33, %v2610_v34  ;;  %v404_v32 = vld [vmem:[%s2494_s30 + $0x3b0] sm:$0xff]  ;;  %v405_v33 = vld [vmem:[%s2494_s30 + $0x3b8] sm:$0xff] }
 0x14a   : > { %v583_v38 = vpop.f32.mrf.mxu0 }
 0x14b   : > { %v584_v44 = vadd.f32 %v2610_v34, %v583_v38  ;;  %v1096_v48 = vmax.f32 %v592_v41, 0.0  ;;  %v407_v38 = vld [vmem:[%s2494_s30 + $0x3c8] sm:$0xff]  ;;  %v473_v41 = vpack.c.bf16 %v405_v33, %v404_v32 }
 0x14c   : > { %v1884_v42 = vpop.f32.mrf.mxu0 }
 0x14d   : > { %v595_v45 = vadd.f32 %v1884_v42, %v2610_v34  ;;  %v1094_v52 = vmax.f32 %v584_v44, 0.0  ;;  %v474_v44 = vpack.c.bf16 %v407_v38, %v406_v36 }
 0x14e   : > { %v586_v47 = vpop.f32.mrf.mxu0 }
 0x14f   : > { %v1097_v49 = vmax.f32 %v595_v45, 0.0  ;;  %v587_v50 = vadd.f32 %v2610_v34, %v586_v47 }
 0x150   : > { %v1887_v51 = vpop.f32.mrf.mxu0  ;;  %1982 = vmatmul.mubr.bf16.gmra.mxu0 %v465_v43 }
 0x151   : > { %v2623_v53 = vpack.c.bf16 %v1097_v49, %v1096_v48  ;;  %v1095_v54 = vmax.f32 %v587_v50, 0.0  ;;  %1985 = vmatprep.mubr.bf16.mxu0 %v466_v46  ;;  %v608_v60 = vadd.f32 %v1887_v51, %v2610_v34 }
 0x152   : > { %v599_v57 = vpop.f32.mrf.mxu0 }
 0x153   : > { %v2630_v61 = vpack.c.bf16 %v1095_v54, %v1094_v52  ;;  %v600_v0 = vadd.f32 %v2610_v34, %v599_v57  ;;  %v1100_v4 = vmax.f32 %v608_v60, 0.0  ;;  %v408_v54 = vld [vmem:[%s2494_s30 + $0x3d0] sm:$0xff]  ;;  %v410_v57 = vld [vmem:[%s2494_s30 + $0x3e0] sm:$0xff] }
 0x154   : > { %v1888_v62 = vpop.f32.mrf.mxu0 }
 0x155   : > { %v611_v1 = vadd.f32 %v1888_v62, %v2610_v34  ;;  %v1098_v8 = vmax.f32 %v600_v0, 0.0  ;;  %v475_v62 = vpack.c.bf16 %v409_v55, %v408_v54 }
 0x156   : > { %v602_v3 = vpop.f32.mrf.mxu0 }
 0x157   : > { %v1101_v5 = vmax.f32 %v611_v1, 0.0  ;;  %v603_v6 = vadd.f32 %v2610_v34, %v602_v3  ;;  %v413_v3 = vld [vmem:[%s2494_s30 + $0x3f8] sm:$0xff] }
 0x158   : > { %v2635_v7 = vpop.f32.mrf.mxu0  ;;  %1986 = vmatmul.mubr.bf16.gmra.mxu0 %v467_v63  ;;  %v476_v63 = vpack.c.bf16 %v411_v58, %v410_v57 }
 0x159   : > { %v2637_v9 = vpack.c.bf16 %v1101_v5, %v1100_v4  ;;  %v1099_v10 = vmax.f32 %v603_v6, 0.0  ;;  %1989 = vmatprep.mubr.bf16.mxu0 %v468_v2  ;;  %v412_v2 = vld [vmem:[%s2494_s30 + $0x3f0] sm:$0xff] }
 0x15a   : > { %v2641_v13 = vpop.f32.mrf.mxu0  ;;  %v477_v6 = vpack.c.bf16 %v413_v3, %v412_v2 }
 0x15b   : > { %v2645_v16 = vpack.c.bf16 %v1099_v10, %v1098_v8 }
 0x15c   : > { %v2647_v17 = vpop.f32.mrf.mxu0 }
 0x15e   : > { %v2649_v20 = vpop.f32.mrf.mxu0 }
 0x160   : > { %v1895_v21 = vpop.f32.mrf.mxu0  ;;  %1990 = vmatmul.mubr.bf16.gmra.mxu0 %v469_v18 }
 0x161   : > { %1993 = vmatprep.mubr.bf16.mxu0 %v470_v19  ;;  %v640_v15 = vadd.f32 %v1895_v21, %v2610_v34 }
 0x162   : > { %v2653_v24 = vpop.f32.mrf.mxu0 }
 0x164   : > { %v1896_v27 = vpop.f32.mrf.mxu0 }
 0x165   : > { %v643_v11 = vadd.f32 %v1896_v27, %v2610_v34 }
 0x166   : > { %v2657_v30 = vpop.f32.mrf.mxu0 }
 0x167   : > { %v1109_v23 = vmax.f32 %v643_v11, 0.0  ;;  %v635_v36 = vadd.f32 %v2610_v34, %v2657_v30 }
 0x168   : > { %v1899_v31 = vpop.f32.mrf.mxu0  ;;  %1994 = vmatmul.mubr.bf16.gmra.mxu0 %v471_v28 }
 0x169   : > { %1997 = vmatprep.mubr.bf16.mxu0 %v472_v29  ;;  %v656_v39 = vadd.f32 %v1899_v31, %v2610_v34  ;;  %v1108_v31 = vmax.f32 %v640_v15, 0.0  ;;  %v1107_v30 = vmax.f32 %v635_v36, 0.0 }
 0x16a   : > { %v647_v35 = vpop.f32.mrf.mxu0 }
 0x16b   : > { %v648_v42 = vadd.f32 %v2610_v34, %v647_v35  ;;  %v1112_v46 = vmax.f32 %v656_v39, 0.0  ;;  %v1229_v38 = vpack.c.bf16 %v1109_v23, %v1108_v31 }
 0x16c   : > { %v1900_v40 = vpop.f32.mrf.mxu0 }
 0x16d   : > { %v659_v43 = vadd.f32 %v1900_v40, %v2610_v34  ;;  %v1110_v50 = vmax.f32 %v648_v42, 0.0  ;;  %v632_v42 = vadd.f32 %v2610_v34, %v2653_v24 }
 0x16e   : > { %v650_v45 = vpop.f32.mrf.mxu0 }
 0x16f   : > { %v1113_v47 = vmax.f32 %v659_v43, 0.0  ;;  %v651_v48 = vadd.f32 %v2610_v34, %v650_v45  ;;  %v1106_v55 = vmax.f32 %v632_v42, 0.0 }
 0x170   : > { %v2667_v49 = vpop.f32.mrf.mxu0  ;;  %1998 = vmatmul.mubr.bf16.gmra.mxu0 %v473_v41 }
 0x171   : > { %v2669_v51 = vpack.c.bf16 %v1113_v47, %v1112_v46  ;;  %v1111_v52 = vmax.f32 %v651_v48, 0.0  ;;  %2001 = vmatprep.mubr.bf16.mxu0 %v474_v44  ;;  %v1228_v3 = vpack.c.bf16 %v1107_v30, %v1106_v55 }
 0x172   : > { %v2673_v56 = vpop.f32.mrf.mxu0 }
 0x173   : > { %v2677_v59 = vpack.c.bf16 %v1111_v52, %v1110_v50 }
 0x174   : > { %v2679_v60 = vpop.f32.mrf.mxu0 }
 0x175   : > { %v675_v36 = vadd.f32 %v2679_v60, %v2610_v34 }
 0x176   : > { %v2681_v0 = vpop.f32.mrf.mxu0 }
 0x178   : > { %v1907_v1 = vpop.f32.mrf.mxu0  ;;  %2002 = vmatmul.mubr.bf16.gmra.mxu0 %v475_v62 }
 0x179   : > { %2005 = vmatprep.mubr.bf16.mxu0 %v476_v63  ;;  %v688_v44 = vadd.f32 %v1907_v1, %v2610_v34  ;;  %v627_v1 = vadd.f32 %v2647_v17, %v2610_v34 }
 0x17a   : > { %v679_v4 = vpop.f32.mrf.mxu0 }
 0x17b   : > { %v1120_v58 = vmax.f32 %v688_v44, 0.0  ;;  %v680_v15 = vadd.f32 %v2610_v34, %v679_v4 }
 0x17c   : > { %v1908_v5 = vpop.f32.mrf.mxu0 }
 0x17d   : > { %v691_v39 = vadd.f32 %v1908_v5, %v2610_v34 }
 0x17e   : > { %v682_v8 = vpop.f32.mrf.mxu0 }
 0x17f   : > { %v1121_v48 = vmax.f32 %v691_v39, 0.0  ;;  %v616_v39 = vadd.f32 %v2610_v34, %v2641_v13  ;;  %v667_v13 = vadd.f32 %v2610_v34, %v2681_v0 }
 0x180   : > { %v1911_v10 = vpop.f32.mrf.mxu0  ;;  %2006 = vmatmul.mubr.bf16.gmra.mxu0 %v477_v6  ;;  %v683_v6 = vadd.f32 %v2610_v34, %v682_v8 }
 0x181   : > { %v704_v14 = vadd.f32 %v1911_v10, %v2610_v34  ;;  %v1235_v5 = vpack.c.bf16 %v1121_v48, %v1120_v58  ;;  %v1102_v44 = vmax.f32 %v616_v39, 0.0 }
 0x182   : > { %v695_v12 = vpop.f32.mrf.mxu0  ;;  %v1119_v23 = vmax.f32 %v683_v6, 0.0 }
 0x183   : > { %v696_v19 = vadd.f32 %v2610_v34, %v695_v12  ;;  %v1124_v26 = vmax.f32 %v704_v14, 0.0  ;;  %v624_v12 = vadd.f32 %v2635_v7, %v2610_v34  ;;  %v1118_v7 = vmax.f32 %v680_v15, 0.0 }
 0x184   : > { %v1912_v18 = vpop.f32.mrf.mxu0 }
 0x185   : > { %v707_v22 = vadd.f32 %v1912_v18, %v2610_v34  ;;  %v1122_v33 = vmax.f32 %v696_v19, 0.0  ;;  %v1105_v19 = vmax.f32 %v627_v1, 0.0 }
 0x186   : > { %v698_v25 = vpop.f32.mrf.mxu0 }
 0x187   : > { %v1125_v28 = vmax.f32 %v707_v22, 0.0  ;;  %v699_v29 = vadd.f32 %v2610_v34, %v698_v25 }
 0x188   : > { %v1915_v32 = vpop.f32.mrf.mxu0 }
 0x189   : > { %v1123_v27 = vmax.f32 %v699_v29, 0.0  ;;  %v1237_v35 = vpack.c.bf16 %v1125_v28, %v1124_v26  ;;  %v720_v41 = vadd.f32 %v1915_v32, %v2610_v34  ;;  %v1104_v28 = vmax.f32 %v624_v12, 0.0 }
 0x18a   : > { %v711_v21 = vpop.f32.mrf.mxu0 }
 0x18b   : > { %v1236_v40 = vpack.c.bf16 %v1123_v27, %v1122_v33  ;;  %1793 = vmatprep.subr.bf16.mxu1 %v1237_v35  ;;  %v712_v45 = vadd.f32 %v2610_v34, %v711_v21  ;;  %v1128_v50 = vmax.f32 %v720_v41, 0.0  ;;  %v1227_v33 = vpack.c.bf16 %v1105_v19, %v1104_v28 }
 0x18c   : > { %v1916_v43 = vpop.f32.mrf.mxu0  ;;  %1794 = vmatpush3.bf16.xpose.msra.mxu1 %v1229_v38  ;;  %v619_v27 = vadd.f32 %v2610_v34, %v2649_v20  ;;  %v1234_v21 = vpack.c.bf16 %v1119_v23, %v1118_v7  ;;  %v672_v41 = vadd.f32 %v2667_v49, %v2610_v34  ;;  %v664_v49 = vadd.f32 %v2610_v34, %v2673_v56 }
 0x18d   : > { %v723_v46 = vadd.f32 %v1916_v43, %v2610_v34  ;;  %1795 = vmatprep.subr.bf16.mxu1 %v1236_v40  ;;  %v1126_v24 = vmax.f32 %v712_v45, 0.0  ;;  %v1117_v43 = vmax.f32 %v675_v36, 0.0 }
 0x18e   : > { %v714_v47 = vpop.f32.mrf.mxu0  ;;  %v1103_v42 = vmax.f32 %v619_v27, 0.0  ;;  %v1116_v60 = vmax.f32 %v672_v41, 0.0  ;;  %v1114_v55 = vmax.f32 %v664_v49, 0.0 }
 0x18f   : > { %v1129_v52 = vmax.f32 %v723_v46, 0.0  ;;  %v715_v54 = vadd.f32 %v2610_v34, %v714_v47 }
 0x190   : > { %v1919_v57 = vpop.f32.mrf.mxu0  ;;  %v1226_v30 = vpack.c.bf16 %v1103_v42, %v1102_v44  ;;  %v1233_v47 = vpack.c.bf16 %v1117_v43, %v1116_v60 }
 0x191   : > { %v2701_v62 = vpack.c.bf16 %v1129_v52, %v1128_v50  ;;  %v1127_v63 = vmax.f32 %v715_v54, 0.0  ;;  %v736_v11 = vadd.f32 %v1919_v57, %v2610_v34  ;;  %v1115_v52 = vmax.f32 %v667_v13, 0.0 }
 0x192   : > { %v727_v2 = vpop.f32.mrf.mxu0 }
 0x193   : > { %v2706_v10 = vpack.c.bf16 %v1127_v63, %v1126_v24  ;;  %v728_v18 = vadd.f32 %v2610_v34, %v727_v2  ;;  %v1132_v8 = vmax.f32 %v736_v11, 0.0  ;;  %v1232_v58 = vpack.c.bf16 %v1115_v52, %v1114_v55 }
 0x194   : > { %v1920_v14 = vpop.f32.mrf.mxu0  ;;  %1796 = vmatpush3.bf16.xpose.msra.mxu1 %v1228_v3 }
 0x195   : > { %v739_v17 = vadd.f32 %v1920_v14, %v2610_v34  ;;  %1797 = vmatprep.subr.bf16.mxu1 %v1235_v5  ;;  %v1130_v31 = vmax.f32 %v728_v18, 0.0 }
 0x196   : > { %v730_v22 = vpop.f32.mrf.mxu0 }
 0x197   : > { %v1133_v25 = vmax.f32 %v739_v17, 0.0  ;;  %v731_v26 = vadd.f32 %v2610_v34, %v730_v22 }
 0x198   : > { %v2715_v29 = vpop.f32.mrf.mxu0 }
 0x199   : > { %v2717_v32 = vpack.c.bf16 %v1133_v25, %v1132_v8  ;;  %v1131_v4 = vmax.f32 %v731_v26, 0.0 }
 0x19a   : > { %v2721_v35 = vpop.f32.mrf.mxu0 }
 0x19b   : > { %v2725_v38 = vpack.c.bf16 %v1131_v4, %v1130_v31 }
 0x19c   : > { %v2729_v40 = vpop.f32.mrf.mxu0  ;;  %1798 = vmatpush3.bf16.xpose.msra.mxu1 %v1227_v33 }
 0x19d   : > { %1799 = vmatprep.subr.bf16.mxu1 %v1234_v21 }
 0x19e   : > { %v2733_v20 = vpop.f32.mrf.mxu0 }
 0x1a0   : > { %v1927_v45 = vpop.f32.mrf.mxu0 }
 0x1a2   : > { %v2735_v46 = vpop.f32.mrf.mxu0 }
 0x1a3   : > { %v760_v13 = vadd.f32 %v2610_v34, %v2735_v46 }
 0x1a4   : > { %v1928_v48 = vpop.f32.mrf.mxu0  ;;  %1800 = vmatpush3.bf16.xpose.msra.mxu1 %v1226_v30 }
 0x1a5   : > { %1801 = vmatprep.subr.bf16.mxu1 %v1233_v47  ;;  %v771_v26 = vadd.f32 %v1928_v48, %v2610_v34 }
 0x1a6   : > { %v762_v50 = vpop.f32.mrf.mxu0 }
 0x1a7   : > { %v1141_v33 = vmax.f32 %v771_v26, 0.0 }
 0x1a8   : > { %v1931_v54 = vpop.f32.mrf.mxu0 }
 0x1a9   : > { %v784_v24 = vadd.f32 %v1931_v54, %v2610_v34 }
 0x1aa   : > { %v775_v57 = vpop.f32.mrf.mxu0 }
 0x1ab   : > { %v776_v1 = vadd.f32 %v2610_v34, %v775_v57  ;;  %v1144_v3 = vmax.f32 %v784_v24, 0.0 }
 0x1ac   : > { %v1932_v63 = vpop.f32.mrf.mxu0  ;;  %1802 = vmatpush3.bf16.xpose.msra.mxu1 %v2637_v9 }
 0x1ad   : > { %v787_v0 = vadd.f32 %v1932_v63, %v2610_v34  ;;  %1803 = vmatprep.subr.bf16.mxu1 %v1232_v58  ;;  %v1142_v11 = vmax.f32 %v776_v1, 0.0  ;;  %v1138_v1 = vmax.f32 %v760_v13, 0.0 }
 0x1ae   : > { %v778_v2 = vpop.f32.mrf.mxu0 }
 0x1af   : > { %v1145_v56 = vmax.f32 %v787_v0, 0.0  ;;  %v779_v5 = vadd.f32 %v2610_v34, %v778_v2 }
 0x1b0   : > { %v2746_v6 = vpop.f32.mrf.mxu0 }
 0x1b1   : > { %v2748_v12 = vpack.c.bf16 %v1145_v56, %v1144_v3  ;;  %v1143_v14 = vmax.f32 %v779_v5, 0.0  ;;  %v755_v5 = vadd.f32 %v2729_v40, %v2610_v34 }
 0x1b2   : > { %v2750_v15 = vpop.f32.mrf.mxu0 }
 0x1b3   : > { %v2752_v18 = vpack.c.bf16 %v1143_v14, %v1142_v11 }
 0x1b4   : > { %v2754_v9 = vpop.f32.mrf.mxu0  ;;  %1804 = vmatpush3.bf16.xpose.msra.mxu1 %v2645_v16  ;;  %v768_v16 = vadd.f32 %v1927_v45, %v2610_v34  ;;  %v763_v45 = vadd.f32 %v2610_v34, %v762_v50 }
 0x1b5   : > { %1805 = vmatprep.subr.bf16.mxu1 %v2669_v51 }
 0x1b6   : > { %v2758_v17 = vpop.f32.mrf.mxu0  ;;  %v1140_v21 = vmax.f32 %v768_v16, 0.0  ;;  %v1139_v54 = vmax.f32 %v763_v45, 0.0 }
 0x1b8   : > { %v1939_v19 = vpop.f32.mrf.mxu0  ;;  %v1245_v44 = vpack.c.bf16 %v1141_v33, %v1140_v21  ;;  %v1244_v11 = vpack.c.bf16 %v1139_v54, %v1138_v1 }
 0x1b9   : > { %v816_v49 = vadd.f32 %v1939_v19, %v2610_v34 }
 0x1ba   : > { %v807_v22 = vpop.f32.mrf.mxu0 }
 0x1bb   : > { %v1152_v0 = vmax.f32 %v816_v49, 0.0  ;;  %v808_v16 = vadd.f32 %v2610_v34, %v807_v22 }
 0x1bc   : > { %v1940_v23 = vpop.f32.mrf.mxu0  ;;  %1806 = vmatpush3.bf16.xpose.msra.mxu1 %v2623_v53 }
 0x1bd   : > { %1807 = vmatprep.subr.bf16.mxu1 %v2677_v59 }
 0x1be   : > { %v810_v8 = vpop.f32.mrf.mxu0 }
 0x1c0   : > { %v1943_v25 = vpop.f32.mrf.mxu0 }
 0x1c1   : > { %v832_v7 = vadd.f32 %v1943_v25, %v2610_v34 }
 0x1c2   : > { %v823_v28 = vpop.f32.mrf.mxu0 }
 0x1c3   : > { %v824_v51 = vadd.f32 %v2610_v34, %v823_v28  ;;  %v1156_v27 = vmax.f32 %v832_v7, 0.0  ;;  %v752_v28 = vadd.f32 %v2715_v29, %v2610_v34  ;;  %v1150_v29 = vmax.f32 %v808_v16, 0.0 }
 0x1c4   : > { %v1944_v31 = vpop.f32.mrf.mxu0  ;;  %1808 = vmatpush3.bf16.xpose.msra.mxu1 %v2630_v61  ;;  %v819_v61 = vadd.f32 %v1940_v23, %v2610_v34  ;;  %v811_v23 = vadd.f32 %v2610_v34, %v810_v8 }
 0x1c5   : > { %v835_v4 = vadd.f32 %v1944_v31, %v2610_v34  ;;  %v1154_v41 = vmax.f32 %v824_v51, 0.0  ;;  %v1137_v51 = vmax.f32 %v755_v5, 0.0 }
 0x1c6   : > { %v826_v53 = vpop.f32.mrf.mxu0  ;;  %v1153_v57 = vmax.f32 %v819_v61, 0.0  ;;  %v1151_v33 = vmax.f32 %v811_v23, 0.0  ;;  %v744_v61 = vadd.f32 %v2610_v34, %v2721_v35  ;;  %v795_v35 = vadd.f32 %v2610_v34, %v2758_v17 }
 0x1c7   : > { %v1157_v59 = vmax.f32 %v835_v4, 0.0  ;;  %v827_v36 = vadd.f32 %v2610_v34, %v826_v53 }
 0x1c8   : > { %v1947_v39 = vpop.f32.mrf.mxu0  ;;  %v1251_v19 = vpack.c.bf16 %v1153_v57, %v1152_v0  ;;  %v1250_v45 = vpack.c.bf16 %v1151_v33, %v1150_v29  ;;  %v1134_v49 = vmax.f32 %v744_v61, 0.0 }
 0x1c9   : > { %v1253_v42 = vpack.c.bf16 %v1157_v59, %v1156_v27  ;;  %v1155_v43 = vmax.f32 %v827_v36, 0.0  ;;  %v848_v47 = vadd.f32 %v1947_v39, %v2610_v34  ;;  %v1136_v59 = vmax.f32 %v752_v28, 0.0 }
 0x1ca   : > { %v839_v60 = vpop.f32.mrf.mxu0 }
 0x1cb   : > { %v1252_v30 = vpack.c.bf16 %v1155_v43, %v1154_v41  ;;  %1810 = vmatmul.mubr.bf16.vlgmr.msra.gmra.mxu1 %v2614_v37  ;;  %1811 = vmatprep.subr.bf16.mxu1 %v1253_v42  ;;  %v840_v50 = vadd.f32 %v2610_v34, %v839_v60  ;;  %v1160_v58 = vmax.f32 %v848_v47, 0.0  ;;  %v1243_v41 = vpack.c.bf16 %v1137_v51, %v1136_v59 }
 0x1cc   : > { %v1948_v48 = vpop.f32.mrf.mxu0  ;;  %1812 = vmatpush3.bf16.xpose.msra.mxu1 %v1245_v44  ;;  %1827 = vmatprep.mubr.bf16.mxu1 %v2614_v37  ;;  %v747_v42 = vadd.f32 %v2610_v34, %v2733_v20  ;;  %v803_v44 = vadd.f32 %v2754_v9, %v2610_v34  ;;  %v800_v47 = vadd.f32 %v2746_v6, %v2610_v34 }
 0x1cd   : > { %v851_v52 = vadd.f32 %v1948_v48, %v2610_v34  ;;  %1813 = vmatprep.subr.bf16.mxu1 %v1252_v30  ;;  %v1158_v2 = vmax.f32 %v840_v50, 0.0  ;;  %v792_v6 = vadd.f32 %v2610_v34, %v2750_v15 }
 0x1ce   : > { %v842_v55 = vpop.f32.mrf.mxu0  ;;  %v1135_v13 = vmax.f32 %v747_v42, 0.0  ;;  %v1149_v48 = vmax.f32 %v803_v44, 0.0  ;;  %v1148_v9 = vmax.f32 %v800_v47, 0.0 }
 0x1cf   : > { %v1161_v24 = vmax.f32 %v851_v52, 0.0  ;;  %v843_v63 = vadd.f32 %v2610_v34, %v842_v55  ;;  %v1146_v1 = vmax.f32 %v792_v6, 0.0 }
 0x1d0   : > { %v1951_v46 = vpop.f32.mrf.mxu0  ;;  %v1242_v52 = vpack.c.bf16 %v1135_v13, %v1134_v49  ;;  %v1249_v55 = vpack.c.bf16 %v1149_v48, %v1148_v9 }
 0x1d1   : > { %v2780_v3 = vpack.c.bf16 %v1161_v24, %v1160_v58  ;;  %v1159_v56 = vmax.f32 %v843_v63, 0.0  ;;  %v864_v26 = vadd.f32 %v1951_v46, %v2610_v34  ;;  %v1147_v24 = vmax.f32 %v795_v35, 0.0 }
 0x1d2   : > { %v855_v14 = vpop.f32.mrf.mxu0 }
 0x1d3   : > { %v2785_v25 = vpack.c.bf16 %v1159_v56, %v1158_v2  ;;  %v856_v31 = vadd.f32 %v2610_v34, %v855_v14  ;;  %v1164_v8 = vmax.f32 %v864_v26, 0.0  ;;  %v1248_v0 = vpack.c.bf16 %v1147_v24, %v1146_v1 }
 0x1d4   : > { %v1952_v7 = vpop.f32.mrf.mxu0  ;;  %1814 = vmatpush3.bf16.xpose.msra.mxu1 %v1244_v11 }
 0x1d5   : > { %v867_v40 = vadd.f32 %v1952_v7, %v2610_v34  ;;  %1815 = vmatprep.subr.bf16.mxu1 %v1251_v19  ;;  %v1162_v21 = vmax.f32 %v856_v31, 0.0 }
 0x1d6   : > { %v858_v4 = vpop.f32.mrf.mxu0 }
 0x1d7   : > { %v1165_v53 = vmax.f32 %v867_v40, 0.0  ;;  %v859_v27 = vadd.f32 %v2610_v34, %v858_v4 }
 0x1d8   : > { %v2794_v36 = vpop.f32.mrf.mxu0 }
 0x1d9   : > { %v2796_v39 = vpack.c.bf16 %v1165_v53, %v1164_v8  ;;  %v1163_v22 = vmax.f32 %v859_v27, 0.0 }
 0x1da   : > { %v2800_v43 = vpop.f32.mrf.mxu0 }
 0x1db   : > { %v2804_v60 = vpack.c.bf16 %v1163_v22, %v1162_v21 }
 0x1dc   : > { %v2808_v30 = vpop.f32.mrf.mxu0  ;;  %1816 = vmatpush3.bf16.xpose.msra.mxu1 %v1243_v41 }
 0x1dd   : > { %1817 = vmatprep.subr.bf16.mxu1 %v1250_v45 }
 0x1de   : > { %v2812_v20 = vpop.f32.mrf.mxu0 }
 0x1e0   : > { %v1959_v50 = vpop.f32.mrf.mxu0 }
 0x1e2   : > { %v2814_v54 = vpop.f32.mrf.mxu0 }
 0x1e3   : > { %v888_v35 = vadd.f32 %v2610_v34, %v2814_v54 }
 0x1e4   : > { %v1960_v57 = vpop.f32.mrf.mxu0  ;;  %1818 = vmatpush3.bf16.xpose.msra.mxu1 %v1242_v52 }
 0x1e5   : > { %1819 = vmatprep.subr.bf16.mxu1 %v1249_v55  ;;  %v899_v27 = vadd.f32 %v1960_v57, %v2610_v34 }
 0x1e6   : > { %v890_v58 = vpop.f32.mrf.mxu0 }
 0x1e7   : > { %v1173_v41 = vmax.f32 %v899_v27, 0.0  ;;  %v880_v27 = vadd.f32 %v2794_v36, %v2610_v34 }
 0x1e8   : > { %v1963_v63 = vpop.f32.mrf.mxu0 }
 0x1e9   : > { %v912_v2 = vadd.f32 %v1963_v63, %v2610_v34 }
 0x1ea   : > { %v903_v46 = vpop.f32.mrf.mxu0 }
 0x1eb   : > { %v904_v5 = vadd.f32 %v2610_v34, %v903_v46  ;;  %v1176_v14 = vmax.f32 %v912_v2, 0.0 }
 0x1ec   : > { %v1964_v56 = vpop.f32.mrf.mxu0  ;;  %1820 = vmatpush3.bf16.xpose.msra.mxu1 %v2717_v32 }
 0x1ed   : > { %v915_v17 = vadd.f32 %v1964_v56, %v2610_v34  ;;  %1821 = vmatprep.subr.bf16.mxu1 %v1248_v0  ;;  %v1174_v26 = vmax.f32 %v904_v5, 0.0  ;;  %v1170_v5 = vmax.f32 %v888_v35, 0.0 }
 0x1ee   : > { %v906_v11 = vpop.f32.mrf.mxu0 }
 0x1ef   : > { %v1177_v15 = vmax.f32 %v915_v17, 0.0  ;;  %v907_v19 = vadd.f32 %v2610_v34, %v906_v11 }
 0x1f0   : > { %v2825_v23 = vpop.f32.mrf.mxu0 }
 0x1f1   : > { %v2827_v28 = vpack.c.bf16 %v1177_v15, %v1176_v14  ;;  %v1175_v7 = vmax.f32 %v907_v19, 0.0  ;;  %v883_v15 = vadd.f32 %v2808_v30, %v2610_v34 }
 0x1f2   : > { %v2829_v16 = vpop.f32.mrf.mxu0 }
 0x1f3   : > { %v2831_v31 = vpack.c.bf16 %v1175_v7, %v1174_v26 }
 0x1f4   : > { %v2833_v32 = vpop.f32.mrf.mxu0  ;;  %1822 = vmatpush3.bf16.xpose.msra.mxu1 %v2725_v38  ;;  %v896_v38 = vadd.f32 %v1959_v50, %v2610_v34  ;;  %v891_v50 = vadd.f32 %v2610_v34, %v890_v58 }
 0x1f5   : > { %1823 = vmatprep.subr.bf16.mxu1 %v2748_v12 }
 0x1f6   : > { %v2837_v40 = vpop.f32.mrf.mxu0  ;;  %v1172_v45 = vmax.f32 %v896_v38, 0.0  ;;  %v1171_v63 = vmax.f32 %v891_v50, 0.0 }
 0x1f8   : > { %v1971_v51 = vpop.f32.mrf.mxu0  ;;  %v1261_v49 = vpack.c.bf16 %v1173_v41, %v1172_v45  ;;  %v1260_v19 = vpack.c.bf16 %v1171_v63, %v1170_v5 }
 0x1f9   : > { %v944_v6 = vadd.f32 %v1971_v51, %v2610_v34 }
 0x1fa   : > { %v935_v4 = vpop.f32.mrf.mxu0 }
 0x1fb   : > { %v1184_v17 = vmax.f32 %v944_v6, 0.0 }
 0x1fc   : > { %v1972_v33 = vpop.f32.mrf.mxu0  ;;  %1824 = vmatpush3.bf16.xpose.msra.mxu1 %v2701_v62 }
 0x1fd   : > { %1825 = vmatprep.subr.bf16.mxu1 %v2752_v18 }
 0x1fe   : > { %v938_v8 = vpop.f32.mrf.mxu0 }
 0x1ff   : > { %v939_v51 = vadd.f32 %v2610_v34, %v938_v8 }
 0x200   : > { %v1975_v53 = vpop.f32.mrf.mxu0 }
 0x201   : > { %v960_v29 = vadd.f32 %v1975_v53, %v2610_v34 }
 0x202   : > { %v951_v59 = vpop.f32.mrf.mxu0 }
 0x203   : > { %v952_v12 = vadd.f32 %v2610_v34, %v951_v59  ;;  %v1188_v42 = vmax.f32 %v960_v29, 0.0  ;;  %v936_v29 = vadd.f32 %v2610_v34, %v935_v4 }
 0x204   : > { %v1976_v21 = vpop.f32.mrf.mxu0  ;;  %1826 = vmatpush3.bf16.xpose.msra.mxu1 %v2706_v10  ;;  %v947_v10 = vadd.f32 %v1972_v33, %v2610_v34 }
 0x205   : > { %v963_v22 = vadd.f32 %v1976_v21, %v2610_v34  ;;  %v1186_v47 = vmax.f32 %v952_v12, 0.0  ;;  %v1169_v21 = vmax.f32 %v883_v15, 0.0  ;;  %v1182_v36 = vmax.f32 %v936_v29, 0.0 }
 0x206   : > { %v954_v62 = vpop.f32.mrf.mxu0  ;;  %v1185_v46 = vmax.f32 %v947_v10, 0.0 }
 0x207   : > { %v1189_v18 = vmax.f32 %v963_v22, 0.0  ;;  %v955_v44 = vadd.f32 %v2610_v34, %v954_v62  ;;  %v1183_v22 = vmax.f32 %v939_v51, 0.0 }
 0x208   : > { %v1979_v61 = vpop.f32.mrf.mxu0  ;;  %v1267_v7 = vpack.c.bf16 %v1185_v46, %v1184_v17 }
 0x209   : > { %v1269_v13 = vpack.c.bf16 %v1189_v18, %v1188_v42  ;;  %v1187_v48 = vmax.f32 %v955_v44, 0.0  ;;  %v976_v55 = vadd.f32 %v1979_v61, %v2610_v34  ;;  %v1168_v42 = vmax.f32 %v880_v27, 0.0 }
 0x20a   : > { %v967_v9 = vpop.f32.mrf.mxu0 }
 0x20b   : > { %v1268_v52 = vpack.c.bf16 %v1187_v48, %v1186_v47  ;;  %1828 = vmatmul.mubr.bf16.vlgmr.msra.gmra.mxu1 %v2614_v37  ;;  %1829 = vmatprep.subr.bf16.mxu1 %v1269_v13  ;;  %v968_v58 = vadd.f32 %v2610_v34, %v967_v9  ;;  %v1192_v0 = vmax.f32 %v976_v55, 0.0  ;;  %v1259_v61 = vpack.c.bf16 %v1169_v21, %v1168_v42 }
 0x20c   : > { %v1980_v57 = vpop.f32.mrf.mxu0  ;;  %1830 = vmatpush3.bf16.xpose.msra.mxu1 %v1261_v49  ;;  %1845 = vmatprep.mubr.bf16.mxu1 %v2614_v37  ;;  %v875_v47 = vadd.f32 %v2610_v34, %v2812_v20  ;;  %v931_v48 = vadd.f32 %v2833_v32, %v2610_v34  ;;  %v1266_v49 = vpack.c.bf16 %v1183_v22, %v1182_v36 }
 0x20d   : > { %v979_v24 = vadd.f32 %v1980_v57, %v2610_v34  ;;  %1831 = vmatprep.subr.bf16.mxu1 %v1268_v52  ;;  %v1190_v11 = vmax.f32 %v968_v58, 0.0  ;;  %v872_v9 = vadd.f32 %v2610_v34, %v2800_v43  ;;  %v928_v52 = vadd.f32 %v2825_v23, %v2610_v34 }
 0x20e   : > { %v970_v1 = vpop.f32.mrf.mxu0  ;;  %v1167_v55 = vmax.f32 %v875_v47, 0.0  ;;  %v1181_v35 = vmax.f32 %v931_v48, 0.0  ;;  %v923_v43 = vadd.f32 %v2610_v34, %v2837_v40  ;;  %v920_v23 = vadd.f32 %v2610_v34, %v2829_v16  ;;  %v2131_v47 = vld [vmem:[#allocation8] ss:$0 sm:$0xff] }
 0x20f   : > { %v1193_v2 = vmax.f32 %v979_v24, 0.0  ;;  %v971_v56 = vadd.f32 %v2610_v34, %v970_v1  ;;  %v1166_v57 = vmax.f32 %v872_v9, 0.0  ;;  %v1180_v32 = vmax.f32 %v928_v52, 0.0 }
 0x210   : > { %v1983_v54 = vpop.f32.mrf.mxu0 }
 0x211   : > { %v2859_v14 = vpack.c.bf16 %v1193_v2, %v1192_v0  ;;  %v1191_v37 = vmax.f32 %v971_v56, 0.0  ;;  %v992_v53 = vadd.f32 %v1983_v54, %v2610_v34  ;;  %v1258_v58 = vpack.c.bf16 %v1167_v55, %v1166_v57 }
 0x212   : > { %v983_v26 = vpop.f32.mrf.mxu0  ;;  %v1265_v63 = vpack.c.bf16 %v1181_v35, %v1180_v32  ;;  %v1179_v0 = vmax.f32 %v923_v43, 0.0  ;;  %v1178_v56 = vmax.f32 %v920_v23, 0.0 }
 0x213   : > { %v2864_v33 = vpack.c.bf16 %v1191_v37, %v1190_v11  ;;  %v984_v38 = vadd.f32 %v2610_v34, %v983_v26  ;;  %v1196_v8 = vmax.f32 %v992_v53, 0.0 }
 0x214   : > { %v1984_v59 = vpop.f32.mrf.mxu0  ;;  %1832 = vmatpush3.bf16.xpose.msra.mxu1 %v1260_v19  ;;  %v1264_v54 = vpack.c.bf16 %v1179_v0, %v1178_v56 }
 0x215   : > { %v995_v30 = vadd.f32 %v1984_v59, %v2610_v34  ;;  %1833 = vmatprep.subr.bf16.mxu1 %v1267_v7  ;;  %v1194_v44 = vmax.f32 %v984_v38, 0.0 }
 0x216   : > { %v986_v12 = vpop.f32.mrf.mxu0 }
 0x217   : > { %v1197_v41 = vmax.f32 %v995_v30, 0.0  ;;  %v987_v62 = vadd.f32 %v2610_v34, %v986_v12 }
 0x218   : > { %v2873_v18 = vpop.f32.mrf.mxu0 }
 0x219   : > { %v2875_v45 = vpack.c.bf16 %v1197_v41, %v1196_v8  ;;  %v1195_v4 = vmax.f32 %v987_v62, 0.0 }
 0x21a   : > { %v2879_v13 = vpop.f32.mrf.mxu0 }
 0x21b   : > { %v2883_v50 = vpack.c.bf16 %v1195_v4, %v1194_v44 }
 0x21c   : > { %v2887_v10 = vpop.f32.mrf.mxu0  ;;  %1834 = vmatpush3.bf16.xpose.msra.mxu1 %v1259_v61 }
 0x21d   : > { %1835 = vmatprep.subr.bf16.mxu1 %v1266_v49  ;;  %v1011_v0 = vadd.f32 %v2131_v47, %v2887_v10 }
 0x21e   : > { %v2891_v20 = vpop.f32.mrf.mxu0 }
 0x220   : > { %v1991_v6 = vpop.f32.mrf.mxu0 }
 0x222   : > { %v2893_v24 = vpop.f32.mrf.mxu0 }
 0x224   : > { %v1992_v1 = vpop.f32.mrf.mxu0  ;;  %1836 = vmatpush3.bf16.xpose.msra.mxu1 %v1258_v58  ;;  %v2132_v58 = vld [vmem:[#allocation9] sm:$0xf] }
 0x225   : > { %1837 = vmatprep.subr.bf16.mxu1 %v1265_v63  ;;  %v1027_v41 = vadd.f32 %v1992_v1, %v2610_v34 }
 0x226   : > { %v1018_v46 = vpop.f32.mrf.mxu0 }
 0x227   : > { %v1205_v4 = vmax.f32 %v1027_v41, 0.0  ;;  %v1019_v57 = vadd.f32 %v2131_v47, %v1018_v46 }
 0x228   : > { %v1995_v2 = vpop.f32.mrf.mxu0 }
 0x229   : > { %v1040_v17 = vadd.f32 %v1995_v2, %v2610_v34  ;;  %v1203_v63 = vmax.f32 %v1019_v57, 0.0 }
 0x22a   : > { %v1031_v5 = vpop.f32.mrf.mxu0 }
 0x22b   : > { %v1032_v37 = vadd.f32 %v2610_v34, %v1031_v5  ;;  %v1208_v19 = vmax.f32 %v1040_v17, 0.0  ;;  %v1008_v5 = vadd.f32 %v2131_v47, %v2873_v18  ;;  %v1201_v17 = vmax.f32 %v1011_v0, 0.0 }
 0x22c   : > { %v1996_v11 = vpop.f32.mrf.mxu0  ;;  %1838 = vmatpush3.bf16.xpose.msra.mxu1 %v2796_v39 }
 0x22d   : > { %v1043_v40 = vadd.f32 %v1996_v11, %v2610_v34  ;;  %1839 = vmatprep.subr.bf16.mxu1 %v1264_v54  ;;  %v1206_v51 = vmax.f32 %v1032_v37, 0.0  ;;  %v1200_v11 = vmax.f32 %v1008_v5, 0.0 }
 0x22e   : > { %v1034_v15 = vpop.f32.mrf.mxu0 }
 0x22f   : > { %v1209_v16 = vmax.f32 %v1043_v40, 0.0  ;;  %v1035_v26 = vadd.f32 %v2610_v34, %v1034_v15  ;;  %v1275_v40 = vpack.c.bf16 %v1201_v17, %v1200_v11  ;;  %v1003_v15 = vadd.f32 %v2131_v47, %v2891_v20 }
 0x230   : > { %v2904_v7 = vpop.f32.mrf.mxu0 }
 0x231   : > { %v2906_v53 = vpack.c.bf16 %v1209_v16, %v1208_v19  ;;  %v1207_v27 = vmax.f32 %v1035_v26, 0.0  ;;  %v1000_v26 = vadd.f32 %v2131_v47, %v2879_v13  ;;  %v1056_v10 = vadd.f32 %v2131_v47, %v2904_v7 }
 0x232   : > { %v2908_v59 = vpop.f32.mrf.mxu0  ;;  %v2938_v13 = vstv %s1451_s25 }
 0x233   : > { %v2910_v29 = vpack.c.bf16 %v1207_v27, %v1206_v51  ;;  %v1199_v51 = vmax.f32 %v1003_v15, 0.0  ;;  %v1198_v27 = vmax.f32 %v1000_v26, 0.0 }
 0x234   : > { %v2000_v39 = vpop.f32.mrf.mxu0  ;;  %1840 = vmatpush3.bf16.xpose.msra.mxu1 %v2804_v60  ;;  %v1024_v60 = vadd.f32 %v1991_v6, %v2610_v34 }
 0x235   : > { %1841 = vmatprep.subr.bf16.mxu1 %v2827_v28  ;;  %v1059_v19 = vadd.f32 %v2131_v47, %v2000_v39 }
 0x236   : > { %v2914_v38 = vpop.f32.mrf.mxu0  ;;  %v1204_v49 = vmax.f32 %v1024_v60, 0.0 }
 0x237   : > { %v1213_v18 = vmax.f32 %v1059_v19, 0.0 }
 0x238   : > { %v2003_v30 = vpop.f32.mrf.mxu0  ;;  %v1277_v35 = vpack.c.bf16 %v1205_v4, %v1204_v49 }
 0x23a   : > { %v1063_v21 = vpop.f32.mrf.mxu0 }
 0x23b   : > { %v1064_v54 = vadd.f32 %v2131_v47, %v1063_v21  ;;  %v1274_v21 = vpack.c.bf16 %v1199_v51, %v1198_v27 }
 0x23c   : > { %v2004_v12 = vpop.f32.mrf.mxu0  ;;  %1842 = vmatpush3.bf16.xpose.msra.mxu1 %v2780_v3 }
 0x23d   : > { %1843 = vmatprep.subr.bf16.mxu1 %v2831_v31  ;;  %v1075_v6 = vadd.f32 %v2131_v47, %v2004_v12  ;;  %v1214_v37 = vmax.f32 %v1064_v54, 0.0 }
 0x23e   : > { %v1066_v22 = vpop.f32.mrf.mxu0 }
 0x23f   : > { %v1217_v43 = vmax.f32 %v1075_v6, 0.0  ;;  %v1067_v46 = vadd.f32 %v2131_v47, %v1066_v22  ;;  %v1051_v22 = vadd.f32 %v2131_v47, %v2914_v38  ;;  %v2321_v6 = vmov 1966171168  }
 0x240   : > { %v2007_v8 = vpop.f32.mrf.mxu0 }
 0x241   : > { %v1088_v42 = vadd.f32 %v2007_v8, %v2610_v34  ;;  %v1048_v8 = vadd.f32 %v2131_v47, %v2908_v59  ;;  %v1211_v20 = vmax.f32 %v1051_v22, 0.0 }
 0x242   : > { %v1079_v62 = vpop.f32.mrf.mxu0 }
 0x243   : > { %v1080_v28 = vadd.f32 %v2610_v34, %v1079_v62  ;;  %v1220_v61 = vmax.f32 %v1088_v42, 0.0  ;;  %v1210_v39 = vmax.f32 %v1048_v8, 0.0 }
 0x244   : > { %v2008_v36 = vpop.f32.mrf.mxu0  ;;  %1844 = vmatpush3.bf16.xpose.msra.mxu1 %v2785_v25  ;;  %v1016_v25 = vadd.f32 %v2131_v47, %v2893_v24  ;;  %v1215_v24 = vmax.f32 %v1067_v46, 0.0 }
 0x245   : > { %v1091_v44 = vadd.f32 %v2008_v36, %v2610_v34  ;;  %v1218_v9 = vmax.f32 %v1080_v28, 0.0  ;;  %v1072_v34 = vadd.f32 %v2131_v47, %v2003_v30  ;;  %v1212_v30 = vmax.f32 %v1056_v10, 0.0 }
 0x246   : > { %v1082_v3 = vpop.f32.mrf.mxu0  ;;  %v1202_v1 = vmax.f32 %v1016_v25, 0.0  ;;  %v1282_v16 = vpack.c.bf16 %v1215_v24, %v1214_v37  ;;  %v1280_v41 = vpack.c.bf16 %v1211_v20, %v1210_v39 }
 0x247   : > { %v1221_v31 = vmax.f32 %v1091_v44, 0.0  ;;  %v1083_v48 = vadd.f32 %v2131_v47, %v1082_v3  ;;  %v1216_v23 = vmax.f32 %v1072_v34, 0.0  ;;  %v1281_v12 = vpack.c.bf16 %v1213_v18, %v1212_v30 }
 0x248   : > { %v1276_v2 = vpack.c.bf16 %v1203_v63, %v1202_v1 }
 0x249   : > { %v1285_v52 = vpack.c.bf16 %v1221_v31, %v1220_v61  ;;  %v1219_v55 = vmax.f32 %v1083_v48, 0.0  ;;  %v1283_v56 = vpack.c.bf16 %v1217_v43, %v1216_v23 }
 0x24b   : > { %v1284_v32 = vpack.c.bf16 %v1219_v55, %v1218_v9  ;;  %1846 = vmatmul.mubr.bf16.vlgmr.msra.gmra.mxu1 %v2132_v58  ;;  %1847 = vmatprep.subr.bf16.mxu1 %v1285_v52 }
 0x24c   : > { %1848 = vmatpush3.bf16.xpose.msra.mxu1 %v1277_v35  ;;  %1863 = vmatprep.mubr.bf16.mxu1 %v2132_v58 }
 0x24d   : > { %1849 = vmatprep.subr.bf16.mxu1 %v1284_v32  ;;  %v1522_v32 = vunpack.c.l.s4 %v2321_v6 }
 0x24f   : > { %v1523_v25 = vunpack.c.0.s8 %v1522_v32 }
 0x254   : > { %1850 = vmatpush3.bf16.xpose.msra.mxu1 %v1276_v2 }
 0x255   : > { %1851 = vmatprep.subr.bf16.mxu1 %v1283_v56 }
 0x25c   : > { %1852 = vmatpush3.bf16.xpose.msra.mxu1 %v1275_v40 }
 0x25d   : > { %1853 = vmatprep.subr.bf16.mxu1 %v1282_v16 }
 0x264   : > { %1854 = vmatpush3.bf16.xpose.msra.mxu1 %v1274_v21 }
 0x265   : > { %1855 = vmatprep.subr.bf16.mxu1 %v1281_v12 }
 0x26c   : > { %1856 = vmatpush3.bf16.xpose.msra.mxu1 %v2875_v45 }
 0x26d   : > { %1857 = vmatprep.subr.bf16.mxu1 %v1280_v41 }
 0x274   : > { %1858 = vmatpush3.bf16.xpose.msra.mxu1 %v2883_v50 }
 0x275   : > { %1859 = vmatprep.subr.bf16.mxu1 %v2906_v53 }
 0x27c   : > { %1860 = vmatpush3.bf16.xpose.msra.mxu1 %v2859_v14 }
 0x27d   : > { %1861 = vmatprep.subr.bf16.mxu1 %v2910_v29 }
 0x284   : > { %1862 = vmatpush3.bf16.xpose.msra.mxu1 %v2864_v33 }
 0x28b   : > { %v1321_v7 = vpop.f32.mrf.mxu1  ;;  %1864 = vmatmul.mubr.bf16.vlgmr.msra.gmra.mxu1 %v2132_v58  ;;  %v1524_v58 = vlaneseq }
 0x28c   : > { %v1453_v59 = vadd.f32 %v2938_v13, %v1321_v7 }
 0x28d   : > { %v1323_v38 = vpop.f32.mrf.mxu1  ;;  %v1525_v34 = vshrl.u32 %v1524_v58, 7 }
 0x28e   : > { %v1706_v45 = vmul.f32 -1.442695, %v1453_v59  ;;  %v1454_v62 = vadd.f32 %v2938_v13, %v1323_v38 }
 0x28f   : > { %v1325_v50 = vpop.f32.mrf.mxu1  ;;  %v1526_v43 = vsub.s32 %v1523_v25, %v1525_v34 }
 0x290   : > { %2099 = vpow2.f32 %v1706_v45  ;;  %v1707_v53 = vmul.f32 -1.442695, %v1454_v62 }
 0x291   : > { %v1326_v42 = vpop.f32.mrf.mxu1 }
 0x292   : > { %2101 = vpow2.f32 %v1707_v53 }
 0x29d   : > { %v2100_v14 = vpop.eup %2099 }
 0x29e   : > { %v1485_v29 = vadd.f32 1.0, %v2100_v14 }
 0x29f   : > { %v2102_v60 = vpop.eup %2101 }
 0x2a0   : > { %2103 = vrcp.f32 %v1485_v29  ;;  %v1486_v33 = vadd.f32 1.0, %v2102_v60 }
 0x2a2   : > { %2105 = vrcp.f32 %v1486_v33 }
 0x2ad   : > { %v2104_v36 = vpop.eup %2103 }
 0x2af   : > { %v2106_v28 = vpop.eup %2105 }
 0x2b0   : > { %v1517_v44 = vcombine.low %v2104_v36, %v2106_v28 }
 0x2b2   : > { %v1527_v0 = vrot.slane %v1517_v44, %v1526_v43 }
 0x2cb   : > { %v1362_v4 = vpop.f32.mrf.mxu1 }
 0x2cc   : > { %v1455_v3 = vadd.f32 %v2938_v13, %v1362_v4 }
 0x2cd   : > { %v1364_v61 = vpop.f32.mrf.mxu1 }
 0x2ce   : > { %v1708_v31 = vmul.f32 -1.442695, %v1455_v3  ;;  %v1456_v47 = vadd.f32 %v2938_v13, %v1364_v61 }
 0x2cf   : > { %v1366_v48 = vpop.f32.mrf.mxu1 }
 0x2d0   : > { %2107 = vpow2.f32 %v1708_v31  ;;  %v1709_v49 = vmul.f32 -1.442695, %v1456_v47 }
 0x2d1   : > { %v1367_v9 = vpop.f32.mrf.mxu1 }
 0x2d2   : > { %2109 = vpow2.f32 %v1709_v49 }
 0x2dd   : > { %v2108_v52 = vpop.eup %2107 }
 0x2de   : > { %v1487_v55 = vadd.f32 1.0, %v2108_v52 }
 0x2df   : > { %v2110_v35 = vpop.eup %2109 }
 0x2e0   : > { %2111 = vrcp.f32 %v1487_v55  ;;  %v1488_v57 = vadd.f32 1.0, %v2110_v35 }
 0x2e2   : > { %2113 = vrcp.f32 %v1488_v57 }
 0x2ed   : > { %v2112_v63 = vpop.eup %2111 }
 0x2ef   : > { %v2114_v1 = vpop.eup %2113 }
 0x2f0   : > { %v1518_v23 = vcombine.low %v2112_v63, %v2114_v1 }
 0x2f2   : > { %v1534_v2 = vrot.slane %v1518_v23, %v1526_v43 }
 0x2f4   : > { %v1549_v56 = vcombine.low %v1527_v0, %v1534_v2 }
 0x2f6   : > { %v1557_v14 = vrot.slane %v1549_v56, %v1526_v43 }
 0x30b   : > { %v1403_v46 = vpop.f32.mrf.mxu1 }
 0x30c   : > { %v1457_v5 = vadd.f32 %v2938_v13, %v1403_v46 }
 0x30d   : > { %v1405_v54 = vpop.f32.mrf.mxu1 }
 0x30e   : > { %v1710_v17 = vmul.f32 -1.442695, %v1457_v5  ;;  %v1458_v24 = vadd.f32 %v2938_v13, %v1405_v54 }
 0x30f   : > { %v1407_v11 = vpop.f32.mrf.mxu1 }
 0x310   : > { %2115 = vpow2.f32 %v1710_v17  ;;  %v1711_v37 = vmul.f32 -1.442695, %v1458_v24 }
 0x311   : > { %v1408_v40 = vpop.f32.mrf.mxu1 }
 0x312   : > { %2117 = vpow2.f32 %v1711_v37 }
 0x31d   : > { %v2116_v15 = vpop.eup %2115 }
 0x31e   : > { %v1489_v19 = vadd.f32 1.0, %v2116_v15 }
 0x31f   : > { %v2118_v16 = vpop.eup %2117 }
 0x320   : > { %2119 = vrcp.f32 %v1489_v19  ;;  %v1490_v26 = vadd.f32 1.0, %v2118_v16 }
 0x322   : > { %2121 = vrcp.f32 %v1490_v26 }
 0x32d   : > { %v2120_v10 = vpop.eup %2119 }
 0x32f   : > { %v2122_v51 = vpop.eup %2121 }
 0x330   : > { %v1519_v18 = vcombine.low %v2120_v10, %v2122_v51 }
 0x332   : > { %v1541_v53 = vrot.slane %v1519_v18, %v1526_v43 }
 0x34b   : > { %v1444_v27 = vpop.f32.mrf.mxu1 }
 0x34c   : > { %v1459_v30 = vadd.f32 %v2938_v13, %v1444_v27 }
 0x34d   : > { %v1446_v21 = vpop.f32.mrf.mxu1 }
 0x34e   : > { %v1712_v12 = vmul.f32 -1.442695, %v1459_v30  ;;  %v1460_v22 = vadd.f32 %v2938_v13, %v1446_v21 }
 0x34f   : > { %v1448_v8 = vpop.f32.mrf.mxu1 }
 0x350   : > { %2123 = vpow2.f32 %v1712_v12  ;;  %v1713_v20 = vmul.f32 -1.442695, %v1460_v22 }
 0x351   : > { %v1449_v39 = vpop.f32.mrf.mxu1 }
 0x352   : > { %2125 = vpow2.f32 %v1713_v20 }
 0x35d   : > { %v2124_v41 = vpop.eup %2123 }
 0x35e   : > { %v1491_v7 = vadd.f32 1.0, %v2124_v41 }
 0x35f   : > { %v2126_v59 = vpop.eup %2125 }
 0x360   : > { %v1492_v38 = vadd.f32 1.0, %v2126_v59  ;;  %2127 = vrcp.f32 %v1491_v7 }
 0x362   : > { %2129 = vrcp.f32 %v1492_v38 }
 0x36d   : > { %v2128_v45 = vpop.eup %2127 }
 0x36f   : > { %v2130_v62 = vpop.eup %2129 }
 0x370   : > { %v1520_v50 = vcombine.low %v2128_v45, %v2130_v62 }
 0x372   : > { %v1548_v13 = vrot.slane %v1520_v50, %v1526_v43 }
 0x374   : > { %v1550_v42 = vcombine.low %v1541_v53, %v1548_v13 }
 0x376   : > { %v1564_v29 = vrot.slane %v1550_v42, %v1526_v43 }
 0x378   : > { %v1565_v60 = vcombine.low %v1557_v14, %v1564_v29 }
 0x37a   : > { %1567 = vst [vmem:[%s283_s16] sm:$0xff] %v1565_v60 }
 0x37b   : > { %2252 = shalt.err (!%p2249_p9)
}
 0x37c   : > { %s2253_s19 = scalar_lea.hbm %s1581_s10, 128  ;;  %s2257_s6 = scalar_lea.hbm %s2988_s5, 1024 }
 0x37d   : > { %p2254_p1 = scmp.ne.s32.totalorder %s1581_s10, %s2253_s19  ;;  %p2258_p10 = scmp.lt.s32.totalorder %s1581_s10, %s2988_s5 }
 0x37e   : > { %p2259_p12 = scmp.lt.s32.totalorder %s2257_s6, %s2253_s19 }
 0x37f   : > { %p2255_p8 = pnand %p2254_p1, %p3006_p6 }
 0x380   : > { %p2260_p2 = por %p2259_p12, %p2258_p10 }
 0x381   : > { %p2256_p5 = pneg %p2255_p8 }
 0x383   : > { %p2261_p4 = pnand %p2260_p2, %p2256_p5 }
 0x385   : > { %2264 = shalt.err (!%p2261_p4)
}
 0x386   : > { %2023 = dma.vmem_to_hbm [thread:$0]  (%p3006_p6), %s1584_s17, 128, %s1581_s10, %s1569_s9  }
 0x387 PF: > { %p2050_p11 = scmp.ge.s32.totalorder %s2311_s23, 2  ;;  %s1595_s27 = sand.u32 1, %s2299_s20  }
 0x388   : > { %p3007_p13 = scmp.ne.s32.totalorder %s2994_s26, 0  ;;  %s1596_s14 = scalar_lea.sflag [#allocation5], %s1595_s27 }
 0x38a   : > { %p2040_p3 = pnand %p2050_p11, %p3007_p13 }
 0x38c   : > { %p2041_p0 = pneg %p2040_p3 }
 0x38e   : > { %2294 = dma.done.wait (%p2041_p0), %s1596_s14, 128  }
 0x38f   : > { %2296 = vsyncadd (%p2041_p0), %s1596_s14, 4294967168  ;;  %p21_p7 = scmp.ge.s32.totalorder %s2435_s29, 10   ;;  %s3008_s20 = smov %s2303_s21 }
 0x390   : > { %s3009_s21 = smov %s2307_s22  ;;  %s3010_s22 = smov %s2445_s7 }
 0x391   : > { %s3011_s23 = smov %s2435_s29  ;;  %23 = sbr.rel (!%p21_p7) target bundleno = 9 (0x9), region = 97 }
 0x396   :  { %1601 = vsyncpa [#allocation4], 1 }
 0x397   :  { %1603 = vsyncpa [#allocation4 + $0x1], 1 }
 0x398   :  { %1604 = vsyncpa [#allocation7], 1 }
 0x399   :  { %1605 = vsyncpa [#allocation10], 1 }
 0x39a   :  { %1606 = vsyncpa [#allocation5], 1 }
 0x39b   :  { %1608 = vsyncpa [#allocation5 + $0x1], 1 }

</bundles_post_ra>
